<compile_context>
chip_gen: v7x
topology: tpu7x:2x2x1
jax: 0.10.0
libtpu: 0.0.40
codegen_flags: <defaults>
</compile_context>

<pallas_src>
import functools
import math

import jax
import jax.numpy as jnp
from jax.experimental import pallas as pl
from jax.experimental.pallas import tpu as pltpu

EPS = 1e-6

_HAS_BUFFERED = hasattr(pl, "Buffered")


# ----------------------------- in-kernel helpers -----------------------------

def _layernorm(x, g, b):
    x32 = x.astype(jnp.float32)                      # f32 statistics
    mu = jnp.mean(x32, axis=-1, keepdims=True)
    xc = x32 - mu
    var = jnp.mean(xc * xc, axis=-1, keepdims=True)
    return xc * jax.lax.rsqrt(var + EPS) * g + b


def _gelu_tanh(x):
    c = 0.7978845608028654  # sqrt(2/pi)
    return 0.5 * x * (1.0 + jnp.tanh(c * (x + 0.044715 * x * x * x)))


# ------------------------- kernel 1: LN1 + QKV proj --------------------------

def qkv_proj_kernel(x_ref, shift_ref, n1_g_ref, n1_b_ref, qkv_w_ref, qkv_b_ref,
                    q_ref, k_ref, v_ref, *, num_heads, head_dim, q_scale):
    D = num_heads * head_dim
    h = _layernorm(x_ref[0], n1_g_ref[...], n1_b_ref[...]) + shift_ref[0]
    qkv = (jnp.dot(h.astype(qkv_w_ref.dtype), qkv_w_ref[...],
                   preferred_element_type=jnp.float32) + qkv_b_ref[...])
    # Head-major write-out (static unroll over heads, no jnp.transpose).
    # 1/sqrt(head_dim) is folded into q once here (cheaper than scaling the
    # (tq, tk) score tiles inside the flash kv loop).
    for hh in range(num_heads):
        lo = hh * head_dim
        hi = lo + head_dim
        q_ref[0, hh] = (qkv[:, lo:hi] * q_scale).astype(q_ref.dtype)
        k_ref[0, hh] = qkv[:, D + lo:D + hi].astype(k_ref.dtype)
        v_ref[0, hh] = qkv[:, 2 * D + lo:2 * D + hi].astype(v_ref.dtype)


# ---------- kernel 2: per-head flash self-attention + out-proj + residual -----

def flash_self_attn_kernel(q_ref, k_ref, v_ref, x_ref, wo_ref, bo_ref, out_ref,
                           m_sc, l_sc, acc_sc, proj_sc):
    h = pl.program_id(2)          # head index
    ki = pl.program_id(3)         # kv tile index
    nh = pl.num_programs(2)
    nk = pl.num_programs(3)

    @pl.when((h == 0) & (ki == 0))
    def _():
        proj_sc[...] = jnp.zeros_like(proj_sc)        # out-proj accumulator

    @pl.when(ki == 0)
    def _():
        m_sc[...] = jnp.full_like(m_sc, -jnp.inf)
        l_sc[...] = jnp.zeros_like(l_sc)
        acc_sc[...] = jnp.zeros_like(acc_sc)

    q = q_ref[0, 0]               # (tq, hd); scale already folded in
    k = k_ref[0, 0]               # (tk, hd)
    v = v_ref[0, 0]               # (tk, hd)

    s = jnp.dot(q, k.T, preferred_element_type=jnp.float32)        # (tq, tk)
    m_prev = m_sc[...]
    m_new = jnp.maximum(m_prev, jnp.max(s, axis=-1, keepdims=True))
    alpha = jnp.exp(m_prev - m_new)
    p = jnp.exp(s - m_new)
    l_sc[...] = alpha * l_sc[...] + jnp.sum(p, axis=-1, keepdims=True)
    acc_sc[...] = alpha * acc_sc[...] + jnp.dot(
        p.astype(v.dtype), v, preferred_element_type=jnp.float32)  # (tq, hd)
    m_sc[...] = m_new

    @pl.when(ki == nk - 1)
    def _():
        o = acc_sc[...] / l_sc[...]          # exact division (parity w/ torch)
        # Per-head out-proj slice (Wo reshaped to (H, hd, D), streamed per h):
        # sum_h o_h @ Wo_h == concat_h(o_h) @ Wo  -> no transpose/concat needed.
        proj_sc[...] += jnp.dot(o.astype(wo_ref.dtype), wo_ref[0],
                                preferred_element_type=jnp.float32)

    @pl.when((h == nh - 1) & (ki == nk - 1))
    def _():
        out_ref[0] = (x_ref[0].astype(jnp.float32) + proj_sc[...]
                      + bo_ref[...].astype(jnp.float32)).astype(out_ref.dtype)


# ---------------------- kernel 3: cross-attention + residual ------------------

def cross_attn_kernel(x_ref, k2_ref, v2_ref, n3_g_ref, n3_b_ref, qw_ref, qb_ref,
                      wo_ref, bo_ref, out_ref, *, num_heads, head_dim, q_scale):
    x32 = x_ref[0].astype(jnp.float32)                # (tq, D) residual in f32
    hq = _layernorm(x32, n3_g_ref[...], n3_b_ref[...])
    q_all = (jnp.dot(hq.astype(qw_ref.dtype), qw_ref[...],
                     preferred_element_type=jnp.float32) + qb_ref[...]) * q_scale
    acc = x32 + bo_ref[...].astype(jnp.float32)       # residual + out-proj bias
    # Text K/V are precomputed in XLA (once per batch element) and arrive
    # head-major: static unroll over heads -> clean 2D MXU matmuls.
    for hh in range(num_heads):
        lo = hh * head_dim
        hi = lo + head_dim
        kh = k2_ref[0, hh]                            # (M, hd)
        vh = v2_ref[0, hh]
        qh = q_all[:, lo:hi].astype(kh.dtype)         # (tq, hd)
        s = jnp.dot(qh, kh.T, preferred_element_type=jnp.float32)   # (tq, M)
        p = jnp.exp(s - jnp.max(s, axis=-1, keepdims=True))
        p = p / jnp.sum(p, axis=-1, keepdims=True)    # exact softmax
        oh = jnp.dot(p.astype(vh.dtype), vh, preferred_element_type=jnp.float32)
        acc = acc + jnp.dot(oh.astype(wo_ref.dtype), wo_ref[hh],
                            preferred_element_type=jnp.float32)
    out_ref[0] = acc.astype(out_ref.dtype)


# --------------------------- kernel 4: MLP + residual --------------------------

def mlp_kernel(x_ref, n2_g_ref, n2_b_ref, f1w_ref, f1b_ref, f2w_ref, f2b_ref,
               out_ref):
    x32 = x_ref[0].astype(jnp.float32)
    h = _layernorm(x32, n2_g_ref[...], n2_b_ref[...])
    h = (jnp.dot(h.astype(f1w_ref.dtype), f1w_ref[...],
                 preferred_element_type=jnp.float32) + f1b_ref[...])
    h = _gelu_tanh(h)
    h = (jnp.dot(h.astype(f2w_ref.dtype), f2w_ref[...],
                 preferred_element_type=jnp.float32) + f2b_ref[...])
    out_ref[0] = (x32 + h).astype(out_ref.dtype)


# ------------------------------- spec helpers ---------------------------------

def _block_spec(shape, index_map, *, single_buffer=False):
    """BlockSpec, optionally single-buffered (for grid-invariant weights)."""
    if single_buffer and _HAS_BUFFERED:
        try:
            return pl.BlockSpec(shape, index_map, pipeline_mode=pl.Buffered(1))
        except TypeError:          # older BlockSpec without pipeline_mode
            pass
    return pl.BlockSpec(shape, index_map)


def _resident(shape, *, single_buffer=True):
    """Whole-array block with a constant index_map: stays resident in VMEM."""
    nd = len(shape)
    return _block_spec(tuple(shape), lambda *args, _nd=nd: (0,) * _nd,
                       single_buffer=single_buffer)


def _pick_tile(n, target):
    if n <= target:
        return n
    for t in range(target, 0, -1):
        if n % t == 0 and t % 8 == 0:
            return t
    return n


def _vmem_limit(weight_arrays, wbuf, stream_bytes, scratch_bytes=0):
    """Scoped-VMEM limit: resident weights (x wbuf) + double-buffered streamed
    tiles + scratch, with ~40% headroom, floored at 32 MiB."""
    w = sum(int(a.size) * a.dtype.itemsize for a in weight_arrays)
    total = w * wbuf + 2 * stream_bytes + scratch_bytes
    return max(int(total * 1.4), 32 * 1024 * 1024)


# --------------------------------- wrapper -------------------------------------

def hydit_block(x, c, text, params, num_heads, *, q_tile=256, kv_tile=1024,
                single_buffer_weights=True):
    B, N, D = x.shape
    _, M, Dt = text.shape
    assert D % num_heads == 0
    hd = D // num_heads
    Dh = params["fc1_w"].shape[1]
    dtype = x.dtype
    q_scale = 1.0 / (hd ** 0.5)

    tq = _pick_tile(N, q_tile)
    tk = _pick_tile(N, kv_tile)
    assert N % tq == 0 and N % tk == 0

    single = single_buffer_weights and _HAS_BUFFERED
    wbuf = 1 if single else 2
    res = functools.partial(_resident, single_buffer=single_buffer_weights)
    asz = jnp.dtype(dtype).itemsize

    # --- tiny per-sample matmuls hoisted to XLA (else recomputed per tile) ----
    shift = (jax.nn.silu(c.astype(jnp.float32)) @ params["mod_w"].astype(jnp.float32)
             + params["mod_b"].astype(jnp.float32))[:, None, :]        # (B,1,D) f32
    kv2 = (text.astype(jnp.float32) @ params["kv_w"].astype(jnp.float32)
           + params["kv_b"].astype(jnp.float32))                        # (B,M,2D)
    k2 = kv2[..., :D].reshape(B, M, num_heads, hd).transpose(0, 2, 1, 3).astype(dtype)
    v2 = kv2[..., D:].reshape(B, M, num_heads, hd).transpose(0, 2, 1, 3).astype(dtype)

    wo1 = params["a1o_w"].reshape(num_heads, hd, D)    # per-head out-proj slices
    wo2 = params["a2o_w"].reshape(num_heads, hd, D)

    # ---- kernel 1: LN1 + shift, fused QKV projection, head-major outputs ----
    vmem1 = _vmem_limit(
        [params[n] for n in ("n1_g", "n1_b", "qkv_w", "qkv_b")], wbuf,
        stream_bytes=(tq * D * asz + D * 4 + 3 * num_heads * tq * hd * asz),
        scratch_bytes=4 * tq * 3 * D)
    q, k, v = pl.pallas_call(
        functools.partial(qkv_proj_kernel, num_heads=num_heads, head_dim=hd,
                          q_scale=q_scale),
        out_shape=(jax.ShapeDtypeStruct((B, num_heads, N, hd), dtype),) * 3,
        grid=(B, N // tq),
        in_specs=[
            pl.BlockSpec((1, tq, D), lambda b, i: (b, i, 0)),
            pl.BlockSpec((1, 1, D), lambda b, i: (b, 0, 0)),
            res(params["n1_g"].shape), res(params["n1_b"].shape),
            res(params["qkv_w"].shape), res(params["qkv_b"].shape),
        ],
        out_specs=(pl.BlockSpec((1, num_heads, tq, hd),
                                lambda b, i: (b, 0, i, 0)),) * 3,
        compiler_params=pltpu.CompilerParams(
            dimension_semantics=("parallel", "parallel"),
            vmem_limit_bytes=vmem1),
    )(x, shift, params["n1_g"], params["n1_b"], params["qkv_w"], params["qkv_b"])

    # ---- kernel 2: per-head flash self-attention + out-proj + residual ----
    vmem2 = _vmem_limit(
        [params["a1o_b"]], wbuf,
        stream_bytes=((tq + 2 * tk) * hd * asz + 2 * tq * D * asz
                      + hd * D * wo1.dtype.itemsize),
        scratch_bytes=4 * (2 * tq * 128 + tq * hd + tq * D))
    x1 = pl.pallas_call(
        flash_self_attn_kernel,
        out_shape=jax.ShapeDtypeStruct((B, N, D), dtype),
        grid=(B, N // tq, num_heads, N // tk),
        in_specs=[
            pl.BlockSpec((1, 1, tq, hd), lambda b, qi, h, ki: (b, h, qi, 0)),  # q
            pl.BlockSpec((1, 1, tk, hd), lambda b, qi, h, ki: (b, h, ki, 0)),  # k
            pl.BlockSpec((1, 1, tk, hd), lambda b, qi, h, ki: (b, h, ki, 0)),  # v
            pl.BlockSpec((1, tq, D), lambda b, qi, h, ki: (b, qi, 0)),         # x
            pl.BlockSpec((1, hd, D), lambda b, qi, h, ki: (h, 0, 0)),          # Wo_h
            res(params["a1o_b"].shape),
        ],
        out_specs=pl.BlockSpec((1, tq, D), lambda b, qi, h, ki: (b, qi, 0)),
        scratch_shapes=[
            pltpu.VMEM((tq, 1), jnp.float32),      # running max
            pltpu.VMEM((tq, 1), jnp.float32),      # running denom
            pltpu.VMEM((tq, hd), jnp.float32),     # per-head f32 accumulator
            pltpu.VMEM((tq, D), jnp.float32),      # out-proj accumulator (over h)
        ],
        compiler_params=pltpu.CompilerParams(
            dimension_semantics=("parallel", "parallel", "arbitrary", "arbitrary"),
            vmem_limit_bytes=vmem2),
    )(q, k, v, x, wo1, params["a1o_b"])

    # ---- kernel 3: cross-attention + residual (text K/V precomputed) ----
    vmem3 = _vmem_limit(
        [params["n3_g"], params["n3_b"], params["q_w"], params["q_b"],
         wo2, params["a2o_b"]], wbuf,
        stream_bytes=(2 * tq * D * asz + 2 * num_heads * M * hd * asz),
        scratch_bytes=4 * (2 * tq * D + tq * max(M, 128)))
    x2 = pl.pallas_call(
        functools.partial(cross_attn_kernel, num_heads=num_heads, head_dim=hd,
                          q_scale=q_scale),
        out_shape=jax.ShapeDtypeStruct((B, N, D), dtype),
        grid=(B, N // tq),
        in_specs=[
            pl.BlockSpec((1, tq, D), lambda b, i: (b, i, 0)),
            pl.BlockSpec((1, num_heads, M, hd), lambda b, i: (b, 0, 0, 0)),
            pl.BlockSpec((1, num_heads, M, hd), lambda b, i: (b, 0, 0, 0)),
            res(params["n3_g"].shape), res(params["n3_b"].shape),
            res(params["q_w"].shape), res(params["q_b"].shape),
            res(wo2.shape), res(params["a2o_b"].shape),
        ],
        out_specs=pl.BlockSpec((1, tq, D), lambda b, i: (b, i, 0)),
        compiler_params=pltpu.CompilerParams(
            dimension_semantics=("parallel", "parallel"),
            vmem_limit_bytes=vmem3),
    )(x1, k2, v2, params["n3_g"], params["n3_b"], params["q_w"], params["q_b"],
      wo2, params["a2o_b"])

    # ---- kernel 4: MLP + residual ----
    vmem4 = _vmem_limit(
        [params[n] for n in ("n2_g", "n2_b", "fc1_w", "fc1_b", "fc2_w", "fc2_b")],
        wbuf, stream_bytes=2 * tq * D * asz,
        scratch_bytes=4 * (tq * Dh + tq * D))
    out = pl.pallas_call(
        mlp_kernel,
        out_shape=jax.ShapeDtypeStruct((B, N, D), dtype),
        grid=(B, N // tq),
        in_specs=[
            pl.BlockSpec((1, tq, D), lambda b, i: (b, i, 0)),
            res(params["n2_g"].shape), res(params["n2_b"].shape),
            res(params["fc1_w"].shape), res(params["fc1_b"].shape),
            res(params["fc2_w"].shape), res(params["fc2_b"].shape),
        ],
        out_specs=pl.BlockSpec((1, tq, D), lambda b, i: (b, i, 0)),
        compiler_params=pltpu.CompilerParams(
            dimension_semantics=("parallel", "parallel"),
            vmem_limit_bytes=vmem4),
    )(x2, params["n2_g"], params["n2_b"], params["fc1_w"], params["fc1_b"],
      params["fc2_w"], params["fc2_b"])
    return out


# ----------------------------- reference (pure JAX) ----------------------------

def ref_forward(x, c, text, p, num_heads):
    B, N, D = x.shape
    hd = D // num_heads

    def ln(v, g, b):
        mu = v.mean(-1, keepdims=True)
        vc = v - mu
        var = (vc * vc).mean(-1, keepdims=True)
        return vc / jnp.sqrt(var + EPS) * g + b

    def mha(q, k, v):
        Lq, Lk = q.shape[1], k.shape[1]
        q = q.reshape(B, Lq, num_heads, hd).transpose(0, 2, 1, 3)
        k = k.reshape(B, Lk, num_heads, hd).transpose(0, 2, 1, 3)
        v = v.reshape(B, Lk, num_heads, hd).transpose(0, 2, 1, 3)
        s = jnp.einsum("bhqd,bhkd->bhqk", q, k) / jnp.sqrt(hd)
        pr = jax.nn.softmax(s, axis=-1)
        o = jnp.einsum("bhqk,bhkd->bhqd", pr, v)
        return o.transpose(0, 2, 1, 3).reshape(B, Lq, D)

    shift = (jax.nn.silu(c) @ p["mod_w"] + p["mod_b"])[:, None, :]
    h = ln(x, p["n1_g"], p["n1_b"]) + shift
    qkv = h @ p["qkv_w"] + p["qkv_b"]
    q, k, v = qkv[..., :D], qkv[..., D:2 * D], qkv[..., 2 * D:]
    x = x + (mha(q, k, v) @ p["a1o_w"] + p["a1o_b"])

    hq = ln(x, p["n3_g"], p["n3_b"])
    q2 = hq @ p["q_w"] + p["q_b"]
    kv2 = text @ p["kv_w"] + p["kv_b"]
    x = x + (mha(q2, kv2[..., :D], kv2[..., D:]) @ p["a2o_w"] + p["a2o_b"])

    hm = ln(x, p["n2_g"], p["n2_b"])
    hm = jax.nn.gelu(hm @ p["fc1_w"] + p["fc1_b"], approximate=True)
    x = x + (hm @ p["fc2_w"] + p["fc2_b"])
    return x


# --------------------------------- param init ----------------------------------

def init_params(key, hidden, c_emb, text_dim, mlp_hidden):
    ks = iter(jax.random.split(key, 32))

    def w(shape, scale=0.02):
        return (scale * jax.random.normal(next(ks), shape)).astype(jnp.float32)

    def gamma(shape):
        return (1.0 + 0.01 * jax.random.normal(next(ks), shape)).astype(jnp.float32)

    D, C, Dt, Dh = hidden, c_emb, text_dim, mlp_hidden
    return {
        "mod_w": w((C, D)), "mod_b": w((1, D)),
        "n1_g": gamma((1, D)), "n1_b": w((1, D)),
        "n2_g": gamma((1, D)), "n2_b": w((1, D)),
        "n3_g": gamma((1, D)), "n3_b": w((1, D)),
        "qkv_w": w((D, 3 * D)), "qkv_b": w((1, 3 * D)),
        "a1o_w": w((D, D)), "a1o_b": w((1, D)),
        "q_w": w((D, D)), "q_b": w((1, D)),
        "kv_w": w((Dt, 2 * D)), "kv_b": w((1, 2 * D)),
        "a2o_w": w((D, D)), "a2o_b": w((1, D)),
        "fc1_w": w((D, Dh)), "fc1_b": w((1, Dh)),
        "fc2_w": w((Dh, D)), "fc2_b": w((1, D)),
    }


# ------------------------------------ main --------------------------------------

if __name__ == "__main__":
    B = 2            # batch
    N = 16           # image-token sequence length
    M = 8            # text-token sequence length
    hidden = 32      # hidden_size
    heads = 2        # num_heads  (head_dim = 16)
    c_emb = 16       # c_emb_size
    text_dim = 64    # text_states_dim (module default 1024; small here)
    mlp_hidden = int(hidden * 4.0)

    key = jax.random.PRNGKey(0)
    kx, kc, kt, kp = jax.random.split(key, 4)
    x = jax.random.normal(kx, (B, N, hidden), dtype=jnp.float32)
    c = jax.random.normal(kc, (B, c_emb), dtype=jnp.float32)
    text_states = jax.random.normal(kt, (B, M, text_dim), dtype=jnp.float32)
    params = init_params(kp, hidden, c_emb, text_dim, mlp_hidden)

    # Small tiles so the flash kv loop and head loop really iterate
    # (2 q-tiles x 2 heads x 2 kv-tiles).
    run = functools.partial(hydit_block, x, c, text_states, params, heads,
                            q_tile=8, kv_tile=8)
    try:
        out = jax.block_until_ready(run())
    except Exception:
        # Fallback for Pallas versions that reject single-buffered
        # (pl.Buffered(1)) weight BlockSpecs: default double-buffering.
        out = jax.block_until_ready(run(single_buffer_weights=False))

    ref = ref_forward(x, c, text_states, params, heads)
    err = float(jnp.max(jnp.abs(out - ref)))
    assert out.shape == (B, N, hidden)
    assert jnp.allclose(out, ref, rtol=1e-2, atol=1e-2), f"max abs err {err}"

    # TODO(synk): rotary embedding (freq_cis_img), qk_norm and the skip branch
    # are not exercised (called with None/False exactly as the reference
    # forward allows).
    print("KERNEL_OK")
</pallas_src>

<mosaic_0001>
module attributes {stable_mosaic.version = 11 : i64} {
  func.func @qkv_proj_kernel(%arg0: i32, %arg1: i32, %arg2: memref<1x8x32xf32, #tpu.memory_space<vmem>>, %arg3: memref<1x1x32xf32, #tpu.memory_space<vmem>>, %arg4: memref<1x32xf32, #tpu.memory_space<vmem>>, %arg5: memref<1x32xf32, #tpu.memory_space<vmem>>, %arg6: memref<32x96xf32, #tpu.memory_space<vmem>>, %arg7: memref<1x96xf32, #tpu.memory_space<vmem>>, %arg8: memref<1x2x8x16xf32, #tpu.memory_space<vmem>>, %arg9: memref<1x2x8x16xf32, #tpu.memory_space<vmem>>, %arg10: memref<1x2x8x16xf32, #tpu.memory_space<vmem>>) attributes {dimension_semantics = [#tpu.dimension_semantics<parallel>, #tpu.dimension_semantics<parallel>], iteration_bounds = array<i64: 2, 2>, scalar_prefetch = 0 : i64, scratch_operands = 0 : i64, tpu.core_type = #tpu.core_type<tc>, window_params = [{transform_indices = @transform_0, window_bounds = array<i64: 1, 8, 32>}, {transform_indices = @transform_1, window_bounds = array<i64: 1, 1, 32>}, {pipeline_mode = #tpu.pipeline_mode<synchronous>, transform_indices = @transform_2, window_bounds = array<i64: 1, 32>}, {pipeline_mode = #tpu.pipeline_mode<synchronous>, transform_indices = @transform_3, window_bounds = array<i64: 1, 32>}, {pipeline_mode = #tpu.pipeline_mode<synchronous>, transform_indices = @transform_4, window_bounds = array<i64: 32, 96>}, {pipeline_mode = #tpu.pipeline_mode<synchronous>, transform_indices = @transform_5, window_bounds = array<i64: 1, 96>}, {transform_indices = @transform_6, window_bounds = array<i64: 1, 2, 8, 16>}, {transform_indices = @transform_7, window_bounds = array<i64: 1, 2, 8, 16>}, {transform_indices = @transform_8, window_bounds = array<i64: 1, 2, 8, 16>}]} {
    %c0 = arith.constant 0 : index
    %c0_0 = arith.constant 0 : index
    %c0_1 = arith.constant 0 : index
    %0 = vector.load %arg2[%c0, %c0_0, %c0_1] : memref<1x8x32xf32, #tpu.memory_space<vmem>>, vector<1x8x32xf32>
    %1 = vector.shape_cast %0 : vector<1x8x32xf32> to vector<8x32xf32>
    %c0_2 = arith.constant 0 : index
    %c0_3 = arith.constant 0 : index
    %2 = vector.load %arg4[%c0_2, %c0_3] : memref<1x32xf32, #tpu.memory_space<vmem>>, vector<1x32xf32>
    %c0_4 = arith.constant 0 : index
    %c0_5 = arith.constant 0 : index
    %3 = vector.load %arg5[%c0_4, %c0_5] : memref<1x32xf32, #tpu.memory_space<vmem>>, vector<1x32xf32>
    %cst = arith.constant dense<0.000000e+00> : vector<8xf32>
    %4 = vector.multi_reduction <add>, %1, %cst [1] : vector<8x32xf32> to vector<8xf32>
    %5 = vector.shape_cast %4 : vector<8xf32> to vector<8x1xf32>
    %cst_6 = arith.constant 3.200000e+01 : f32
    %6 = vector.broadcast %cst_6 : f32 to vector<8x1xf32>
    %7 = arith.divf %5, %6 : vector<8x1xf32>
    %8 = vector.broadcast %7 : vector<8x1xf32> to vector<8x32xf32>
    %9 = arith.subf %1, %8 : vector<8x32xf32>
    %10 = arith.mulf %9, %9 : vector<8x32xf32>
    %cst_7 = arith.constant dense<0.000000e+00> : vector<8xf32>
    %11 = vector.multi_reduction <add>, %10, %cst_7 [1] : vector<8x32xf32> to vector<8xf32>
    %12 = vector.shape_cast %11 : vector<8xf32> to vector<8x1xf32>
    %cst_8 = arith.constant 3.200000e+01 : f32
    %13 = vector.broadcast %cst_8 : f32 to vector<8x1xf32>
    %14 = arith.divf %12, %13 : vector<8x1xf32>
    %cst_9 = arith.constant 9.99999997E-7 : f32
    %15 = vector.broadcast %cst_9 : f32 to vector<8x1xf32>
    %16 = arith.addf %14, %15 : vector<8x1xf32>
    %17 = math.rsqrt %16 : vector<8x1xf32>
    %18 = vector.broadcast %17 : vector<8x1xf32> to vector<8x32xf32>
    %19 = arith.mulf %9, %18 : vector<8x32xf32>
    %20 = vector.broadcast %2 : vector<1x32xf32> to vector<8x32xf32>
    %21 = arith.mulf %19, %20 : vector<8x32xf32>
    %22 = vector.broadcast %3 : vector<1x32xf32> to vector<8x32xf32>
    %23 = arith.addf %21, %22 : vector<8x32xf32>
    %c0_10 = arith.constant 0 : index
    %c0_11 = arith.constant 0 : index
    %c0_12 = arith.constant 0 : index
    %24 = vector.load %arg3[%c0_10, %c0_11, %c0_12] : memref<1x1x32xf32, #tpu.memory_space<vmem>>, vector<1x1x32xf32>
    %25 = vector.shape_cast %24 : vector<1x1x32xf32> to vector<1x32xf32>
    %26 = vector.broadcast %25 : vector<1x32xf32> to vector<8x32xf32>
    %27 = arith.addf %23, %26 : vector<8x32xf32>
    %c0_13 = arith.constant 0 : index
    %c0_14 = arith.constant 0 : index
    %28 = vector.load %arg6[%c0_13, %c0_14] : memref<32x96xf32, #tpu.memory_space<vmem>>, vector<32x96xf32>
    %cst_15 = arith.constant dense<0.000000e+00> : vector<8x96xf32>
    %29 = tpu.matmul %27, %28, %cst_15 {dimension_numbers = #tpu.dot_dimension_numbers<[1], [0], [0], [1], [0, 0, 1, 1], [], []>} : vector<8x32xf32>, vector<32x96xf32>, vector<8x96xf32> -> vector<8x96xf32>
    %c0_16 = arith.constant 0 : index
    %c0_17 = arith.constant 0 : index
    %30 = vector.load %arg7[%c0_16, %c0_17] : memref<1x96xf32, #tpu.memory_space<vmem>>, vector<1x96xf32>
    %31 = vector.broadcast %30 : vector<1x96xf32> to vector<8x96xf32>
    %32 = arith.addf %29, %31 : vector<8x96xf32>
    %33 = vector.extract_strided_slice %32 {offsets = [0, 0], sizes = [8, 16], strides = [1, 1]} : vector<8x96xf32> to vector<8x16xf32>
    %cst_18 = arith.constant 2.500000e-01 : f32
    %34 = vector.broadcast %cst_18 : f32 to vector<8x16xf32>
    %35 = arith.mulf %33, %34 : vector<8x16xf32>
    %c0_19 = arith.constant 0 : index
    %c0_20 = arith.constant 0 : index
    %c0_21 = arith.constant 0 : index
    %c0_22 = arith.constant 0 : index
    %36 = vector.load %arg8[%c0_19, %c0_20, %c0_21, %c0_22] : memref<1x2x8x16xf32, #tpu.memory_space<vmem>>, vector<1x1x8x16xf32>
    %37 = vector.shape_cast %36 : vector<1x1x8x16xf32> to vector<8x16xf32>
    %38 = vector.shape_cast %35 : vector<8x16xf32> to vector<1x1x8x16xf32>
    tpu.vector_store %arg8[%c0_19, %c0_20, %c0_21, %c0_22], %38 {strides = array<i32>} : memref<1x2x8x16xf32, #tpu.memory_space<vmem>>, vector<1x1x8x16xf32>,
    %39 = vector.extract_strided_slice %32 {offsets = [0, 32], sizes = [8, 16], strides = [1, 1]} : vector<8x96xf32> to vector<8x16xf32>
    %c0_23 = arith.constant 0 : index
    %c0_24 = arith.constant 0 : index
    %c0_25 = arith.constant 0 : index
    %c0_26 = arith.constant 0 : index
    %40 = vector.load %arg9[%c0_23, %c0_24, %c0_25, %c0_26] : memref<1x2x8x16xf32, #tpu.memory_space<vmem>>, vector<1x1x8x16xf32>
    %41 = vector.shape_cast %40 : vector<1x1x8x16xf32> to vector<8x16xf32>
    %42 = vector.shape_cast %39 : vector<8x16xf32> to vector<1x1x8x16xf32>
    tpu.vector_store %arg9[%c0_23, %c0_24, %c0_25, %c0_26], %42 {strides = array<i32>} : memref<1x2x8x16xf32, #tpu.memory_space<vmem>>, vector<1x1x8x16xf32>,
    %43 = vector.extract_strided_slice %32 {offsets = [0, 64], sizes = [8, 16], strides = [1, 1]} : vector<8x96xf32> to vector<8x16xf32>
    %c0_27 = arith.constant 0 : index
    %c0_28 = arith.constant 0 : index
    %c0_29 = arith.constant 0 : index
    %c0_30 = arith.constant 0 : index
    %44 = vector.load %arg10[%c0_27, %c0_28, %c0_29, %c0_30] : memref<1x2x8x16xf32, #tpu.memory_space<vmem>>, vector<1x1x8x16xf32>
    %45 = vector.shape_cast %44 : vector<1x1x8x16xf32> to vector<8x16xf32>
    %46 = vector.shape_cast %43 : vector<8x16xf32> to vector<1x1x8x16xf32>
    tpu.vector_store %arg10[%c0_27, %c0_28, %c0_29, %c0_30], %46 {strides = array<i32>} : memref<1x2x8x16xf32, #tpu.memory_space<vmem>>, vector<1x1x8x16xf32>,
    %47 = vector.extract_strided_slice %32 {offsets = [0, 16], sizes = [8, 16], strides = [1, 1]} : vector<8x96xf32> to vector<8x16xf32>
    %cst_31 = arith.constant 2.500000e-01 : f32
    %48 = vector.broadcast %cst_31 : f32 to vector<8x16xf32>
    %49 = arith.mulf %47, %48 : vector<8x16xf32>
    %c0_32 = arith.constant 0 : index
    %c1 = arith.constant 1 : index
    %c0_33 = arith.constant 0 : index
    %c0_34 = arith.constant 0 : index
    %50 = vector.load %arg8[%c0_32, %c1, %c0_33, %c0_34] : memref<1x2x8x16xf32, #tpu.memory_space<vmem>>, vector<1x1x8x16xf32>
    %51 = vector.shape_cast %50 : vector<1x1x8x16xf32> to vector<8x16xf32>
    %52 = vector.shape_cast %49 : vector<8x16xf32> to vector<1x1x8x16xf32>
    tpu.vector_store %arg8[%c0_32, %c1, %c0_33, %c0_34], %52 {strides = array<i32>} : memref<1x2x8x16xf32, #tpu.memory_space<vmem>>, vector<1x1x8x16xf32>,
    %53 = vector.extract_strided_slice %32 {offsets = [0, 48], sizes = [8, 16], strides = [1, 1]} : vector<8x96xf32> to vector<8x16xf32>
    %c0_35 = arith.constant 0 : index
    %c1_36 = arith.constant 1 : index
    %c0_37 = arith.constant 0 : index
    %c0_38 = arith.constant 0 : index
    %54 = vector.load %arg9[%c0_35, %c1_36, %c0_37, %c0_38] : memref<1x2x8x16xf32, #tpu.memory_space<vmem>>, vector<1x1x8x16xf32>
    %55 = vector.shape_cast %54 : vector<1x1x8x16xf32> to vector<8x16xf32>
    %56 = vector.shape_cast %53 : vector<8x16xf32> to vector<1x1x8x16xf32>
    tpu.vector_store %arg9[%c0_35, %c1_36, %c0_37, %c0_38], %56 {strides = array<i32>} : memref<1x2x8x16xf32, #tpu.memory_space<vmem>>, vector<1x1x8x16xf32>,
    %57 = vector.extract_strided_slice %32 {offsets = [0, 80], sizes = [8, 16], strides = [1, 1]} : vector<8x96xf32> to vector<8x16xf32>
    %c0_39 = arith.constant 0 : index
    %c1_40 = arith.constant 1 : index
    %c0_41 = arith.constant 0 : index
    %c0_42 = arith.constant 0 : index
    %58 = vector.load %arg10[%c0_39, %c1_40, %c0_41, %c0_42] : memref<1x2x8x16xf32, #tpu.memory_space<vmem>>, vector<1x1x8x16xf32>
    %59 = vector.shape_cast %58 : vector<1x1x8x16xf32> to vector<8x16xf32>
    %60 = vector.shape_cast %57 : vector<8x16xf32> to vector<1x1x8x16xf32>
    tpu.vector_store %arg10[%c0_39, %c1_40, %c0_41, %c0_42], %60 {strides = array<i32>} : memref<1x2x8x16xf32, #tpu.memory_space<vmem>>, vector<1x1x8x16xf32>,
    return
  }
  func.func @transform_0(%arg0: i32, %arg1: i32) -> (i32, i32, i32) {
    %c0_i32 = arith.constant 0 : i32
    %c0_i32_0 = arith.constant 0 : i32
    return %arg0, %arg1, %c0_i32 : i32, i32, i32
  }
  func.func @transform_1(%arg0: i32, %arg1: i32) -> (i32, i32, i32) {
    %c0_i32 = arith.constant 0 : i32
    %c0_i32_0 = arith.constant 0 : i32
    %c0_i32_1 = arith.constant 0 : i32
    return %arg0, %c0_i32, %c0_i32_0 : i32, i32, i32
  }
  func.func @transform_2(%arg0: i32, %arg1: i32) -> (i32, i32) {
    %c0_i32 = arith.constant 0 : i32
    %c0_i32_0 = arith.constant 0 : i32
    %c0_i32_1 = arith.constant 0 : i32
    return %c0_i32, %c0_i32_0 : i32, i32
  }
  func.func @transform_3(%arg0: i32, %arg1: i32) -> (i32, i32) {
    %c0_i32 = arith.constant 0 : i32
    %c0_i32_0 = arith.constant 0 : i32
    %c0_i32_1 = arith.constant 0 : i32
    return %c0_i32, %c0_i32_0 : i32, i32
  }
  func.func @transform_4(%arg0: i32, %arg1: i32) -> (i32, i32) {
    %c0_i32 = arith.constant 0 : i32
    %c0_i32_0 = arith.constant 0 : i32
    %c0_i32_1 = arith.constant 0 : i32
    return %c0_i32, %c0_i32_0 : i32, i32
  }
  func.func @transform_5(%arg0: i32, %arg1: i32) -> (i32, i32) {
    %c0_i32 = arith.constant 0 : i32
    %c0_i32_0 = arith.constant 0 : i32
    %c0_i32_1 = arith.constant 0 : i32
    return %c0_i32, %c0_i32_0 : i32, i32
  }
  func.func @transform_6(%arg0: i32, %arg1: i32) -> (i32, i32, i32, i32) {
    %c0_i32 = arith.constant 0 : i32
    %c0_i32_0 = arith.constant 0 : i32
    %c0_i32_1 = arith.constant 0 : i32
    return %arg0, %c0_i32, %arg1, %c0_i32_0 : i32, i32, i32, i32
  }
  func.func @transform_7(%arg0: i32, %arg1: i32) -> (i32, i32, i32, i32) {
    %c0_i32 = arith.constant 0 : i32
    %c0_i32_0 = arith.constant 0 : i32
    %c0_i32_1 = arith.constant 0 : i32
    return %arg0, %c0_i32, %arg1, %c0_i32_0 : i32, i32, i32, i32
  }
  func.func @transform_8(%arg0: i32, %arg1: i32) -> (i32, i32, i32, i32) {
    %c0_i32 = arith.constant 0 : i32
    %c0_i32_0 = arith.constant 0 : i32
    %c0_i32_1 = arith.constant 0 : i32
    return %arg0, %c0_i32, %arg1, %c0_i32_0 : i32, i32, i32, i32
  }
}

module attributes {stable_mosaic.version = 11 : i64} {
  func.func @qkv_proj_kernel(%arg0: i32, %arg1: i32, %arg2: memref<1x8x32xf32, #tpu.memory_space<vmem>>, %arg3: memref<1x1x32xf32, #tpu.memory_space<vmem>>, %arg4: memref<1x32xf32, #tpu.memory_space<vmem>>, %arg5: memref<1x32xf32, #tpu.memory_space<vmem>>, %arg6: memref<32x96xf32, #tpu.memory_space<vmem>>, %arg7: memref<1x96xf32, #tpu.memory_space<vmem>>, %arg8: memref<1x2x8x16xf32, #tpu.memory_space<vmem>>, %arg9: memref<1x2x8x16xf32, #tpu.memory_space<vmem>>, %arg10: memref<1x2x8x16xf32, #tpu.memory_space<vmem>>) attributes {dimension_semantics = [#tpu.dimension_semantics<parallel>, #tpu.dimension_semantics<parallel>], iteration_bounds = array<i64: 2, 2>, scalar_prefetch = 0 : i64, scratch_operands = 0 : i64, tpu.core_type = #tpu.core_type<tc>, window_params = [{transform_indices = @transform_0, window_bounds = array<i64: 1, 8, 32>}, {transform_indices = @transform_1, window_bounds = array<i64: 1, 1, 32>}, {pipeline_mode = #tpu.pipeline_mode<synchronous>, transform_indices = @transform_2, window_bounds = array<i64: 1, 32>}, {pipeline_mode = #tpu.pipeline_mode<synchronous>, transform_indices = @transform_3, window_bounds = array<i64: 1, 32>}, {pipeline_mode = #tpu.pipeline_mode<synchronous>, transform_indices = @transform_4, window_bounds = array<i64: 32, 96>}, {pipeline_mode = #tpu.pipeline_mode<synchronous>, transform_indices = @transform_5, window_bounds = array<i64: 1, 96>}, {transform_indices = @transform_6, window_bounds = array<i64: 1, 2, 8, 16>}, {transform_indices = @transform_7, window_bounds = array<i64: 1, 2, 8, 16>}, {transform_indices = @transform_8, window_bounds = array<i64: 1, 2, 8, 16>}]} {
    %c0 = arith.constant 0 : index
    %c0_0 = arith.constant 0 : index
    %c0_1 = arith.constant 0 : index
    %0 = vector.load %arg2[%c0, %c0_0, %c0_1] : memref<1x8x32xf32, #tpu.memory_space<vmem>>, vector<1x8x32xf32>
    %1 = vector.shape_cast %0 : vector<1x8x32xf32> to vector<8x32xf32>
    %c0_2 = arith.constant 0 : index
    %c0_3 = arith.constant 0 : index
    %2 = vector.load %arg4[%c0_2, %c0_3] : memref<1x32xf32, #tpu.memory_space<vmem>>, vector<1x32xf32>
    %c0_4 = arith.constant 0 : index
    %c0_5 = arith.constant 0 : index
    %3 = vector.load %arg5[%c0_4, %c0_5] : memref<1x32xf32, #tpu.memory_space<vmem>>, vector<1x32xf32>
    %cst = arith.constant dense<0.000000e+00> : vector<8xf32>
    %4 = vector.multi_reduction <add>, %1, %cst [1] : vector<8x32xf32> to vector<8xf32>
    %5 = vector.shape_cast %4 : vector<8xf32> to vector<8x1xf32>
    %cst_6 = arith.constant 3.200000e+01 : f32
    %6 = vector.broadcast %cst_6 : f32 to vector<8x1xf32>
    %7 = arith.divf %5, %6 : vector<8x1xf32>
    %8 = vector.broadcast %7 : vector<8x1xf32> to vector<8x32xf32>
    %9 = arith.subf %1, %8 : vector<8x32xf32>
    %10 = arith.mulf %9, %9 : vector<8x32xf32>
    %cst_7 = arith.constant dense<0.000000e+00> : vector<8xf32>
    %11 = vector.multi_reduction <add>, %10, %cst_7 [1] : vector<8x32xf32> to vector<8xf32>
    %12 = vector.shape_cast %11 : vector<8xf32> to vector<8x1xf32>
    %cst_8 = arith.constant 3.200000e+01 : f32
    %13 = vector.broadcast %cst_8 : f32 to vector<8x1xf32>
    %14 = arith.divf %12, %13 : vector<8x1xf32>
    %cst_9 = arith.constant 9.99999997E-7 : f32
    %15 = vector.broadcast %cst_9 : f32 to vector<8x1xf32>
    %16 = arith.addf %14, %15 : vector<8x1xf32>
    %17 = math.rsqrt %16 : vector<8x1xf32>
    %18 = vector.broadcast %17 : vector<8x1xf32> to vector<8x32xf32>
    %19 = arith.mulf %9, %18 : vector<8x32xf32>
    %20 = vector.broadcast %2 : vector<1x32xf32> to vector<8x32xf32>
    %21 = arith.mulf %19, %20 : vector<8x32xf32>
    %22 = vector.broadcast %3 : vector<1x32xf32> to vector<8x32xf32>
    %23 = arith.addf %21, %22 : vector<8x32xf32>
    %c0_10 = arith.constant 0 : index
    %c0_11 = arith.constant 0 : index
    %c0_12 = arith.constant 0 : index
    %24 = vector.load %arg3[%c0_10, %c0_11, %c0_12] : memref<1x1x32xf32, #tpu.memory_space<vmem>>, vector<1x1x32xf32>
    %25 = vector.shape_cast %24 : vector<1x1x32xf32> to vector<1x32xf32>
    %26 = vector.broadcast %25 : vector<1x32xf32> to vector<8x32xf32>
    %27 = arith.addf %23, %26 : vector<8x32xf32>
    %c0_13 = arith.constant 0 : index
    %c0_14 = arith.constant 0 : index
    %28 = vector.load %arg6[%c0_13, %c0_14] : memref<32x96xf32, #tpu.memory_space<vmem>>, vector<32x96xf32>
    %cst_15 = arith.constant dense<0.000000e+00> : vector<8x96xf32>
    %29 = tpu.matmul %27, %28, %cst_15 {dimension_numbers = #tpu.dot_dimension_numbers<[1], [0], [0], [1], [0, 0, 1, 1], [], []>} : vector<8x32xf32>, vector<32x96xf32>, vector<8x96xf32> -> vector<8x96xf32>
    %c0_16 = arith.constant 0 : index
    %c0_17 = arith.constant 0 : index
    %30 = vector.load %arg7[%c0_16, %c0_17] : memref<1x96xf32, #tpu.memory_space<vmem>>, vector<1x96xf32>
    %31 = vector.broadcast %30 : vector<1x96xf32> to vector<8x96xf32>
    %32 = arith.addf %29, %31 : vector<8x96xf32>
    %33 = vector.extract_strided_slice %32 {offsets = [0, 0], sizes = [8, 16], strides = [1, 1]} : vector<8x96xf32> to vector<8x16xf32>
    %cst_18 = arith.constant 2.500000e-01 : f32
    %34 = vector.broadcast %cst_18 : f32 to vector<8x16xf32>
    %35 = arith.mulf %33, %34 : vector<8x16xf32>
    %c0_19 = arith.constant 0 : index
    %c0_20 = arith.constant 0 : index
    %c0_21 = arith.constant 0 : index
    %c0_22 = arith.constant 0 : index
    %36 = vector.load %arg8[%c0_19, %c0_20, %c0_21, %c0_22] : memref<1x2x8x16xf32, #tpu.memory_space<vmem>>, vector<1x1x8x16xf32>
    %37 = vector.shape_cast %36 : vector<1x1x8x16xf32> to vector<8x16xf32>
    %38 = vector.shape_cast %35 : vector<8x16xf32> to vector<1x1x8x16xf32>
    tpu.vector_store %arg8[%c0_19, %c0_20, %c0_21, %c0_22], %38 {strides = array<i32>} : memref<1x2x8x16xf32, #tpu.memory_space<vmem>>, vector<1x1x8x16xf32>,
    %39 = vector.extract_strided_slice %32 {offsets = [0, 32], sizes = [8, 16], strides = [1, 1]} : vector<8x96xf32> to vector<8x16xf32>
    %c0_23 = arith.constant 0 : index
    %c0_24 = arith.constant 0 : index
    %c0_25 = arith.constant 0 : index
    %c0_26 = arith.constant 0 : index
    %40 = vector.load %arg9[%c0_23, %c0_24, %c0_25, %c0_26] : memref<1x2x8x16xf32, #tpu.memory_space<vmem>>, vector<1x1x8x16xf32>
    %41 = vector.shape_cast %40 : vector<1x1x8x16xf32> to vector<8x16xf32>
    %42 = vector.shape_cast %39 : vector<8x16xf32> to vector<1x1x8x16xf32>
    tpu.vector_store %arg9[%c0_23, %c0_24, %c0_25, %c0_26], %42 {strides = array<i32>} : memref<1x2x8x16xf32, #tpu.memory_space<vmem>>, vector<1x1x8x16xf32>,
    %43 = vector.extract_strided_slice %32 {offsets = [0, 64], sizes = [8, 16], strides = [1, 1]} : vector<8x96xf32> to vector<8x16xf32>
    %c0_27 = arith.constant 0 : index
    %c0_28 = arith.constant 0 : index
    %c0_29 = arith.constant 0 : index
    %c0_30 = arith.constant 0 : index
    %44 = vector.load %arg10[%c0_27, %c0_28, %c0_29, %c0_30] : memref<1x2x8x16xf32, #tpu.memory_space<vmem>>, vector<1x1x8x16xf32>
    %45 = vector.shape_cast %44 : vector<1x1x8x16xf32> to vector<8x16xf32>
    %46 = vector.shape_cast %43 : vector<8x16xf32> to vector<1x1x8x16xf32>
    tpu.vector_store %arg10[%c0_27, %c0_28, %c0_29, %c0_30], %46 {strides = array<i32>} : memref<1x2x8x16xf32, #tpu.memory_space<vmem>>, vector<1x1x8x16xf32>,
    %47 = vector.extract_strided_slice %32 {offsets = [0, 16], sizes = [8, 16], strides = [1, 1]} : vector<8x96xf32> to vector<8x16xf32>
    %cst_31 = arith.constant 2.500000e-01 : f32
    %48 = vector.broadcast %cst_31 : f32 to vector<8x16xf32>
    %49 = arith.mulf %47, %48 : vector<8x16xf32>
    %c0_32 = arith.constant 0 : index
    %c1 = arith.constant 1 : index
    %c0_33 = arith.constant 0 : index
    %c0_34 = arith.constant 0 : index
    %50 = vector.load %arg8[%c0_32, %c1, %c0_33, %c0_34] : memref<1x2x8x16xf32, #tpu.memory_space<vmem>>, vector<1x1x8x16xf32>
    %51 = vector.shape_cast %50 : vector<1x1x8x16xf32> to vector<8x16xf32>
    %52 = vector.shape_cast %49 : vector<8x16xf32> to vector<1x1x8x16xf32>
    tpu.vector_store %arg8[%c0_32, %c1, %c0_33, %c0_34], %52 {strides = array<i32>} : memref<1x2x8x16xf32, #tpu.memory_space<vmem>>, vector<1x1x8x16xf32>,
    %53 = vector.extract_strided_slice %32 {offsets = [0, 48], sizes = [8, 16], strides = [1, 1]} : vector<8x96xf32> to vector<8x16xf32>
    %c0_35 = arith.constant 0 : index
    %c1_36 = arith.constant 1 : index
    %c0_37 = arith.constant 0 : index
    %c0_38 = arith.constant 0 : index
    %54 = vector.load %arg9[%c0_35, %c1_36, %c0_37, %c0_38] : memref<1x2x8x16xf32, #tpu.memory_space<vmem>>, vector<1x1x8x16xf32>
    %55 = vector.shape_cast %54 : vector<1x1x8x16xf32> to vector<8x16xf32>
    %56 = vector.shape_cast %53 : vector<8x16xf32> to vector<1x1x8x16xf32>
    tpu.vector_store %arg9[%c0_35, %c1_36, %c0_37, %c0_38], %56 {strides = array<i32>} : memref<1x2x8x16xf32, #tpu.memory_space<vmem>>, vector<1x1x8x16xf32>,
    %57 = vector.extract_strided_slice %32 {offsets = [0, 80], sizes = [8, 16], strides = [1, 1]} : vector<8x96xf32> to vector<8x16xf32>
    %c0_39 = arith.constant 0 : index
    %c1_40 = arith.constant 1 : index
    %c0_41 = arith.constant 0 : index
    %c0_42 = arith.constant 0 : index
    %58 = vector.load %arg10[%c0_39, %c1_40, %c0_41, %c0_42] : memref<1x2x8x16xf32, #tpu.memory_space<vmem>>, vector<1x1x8x16xf32>
    %59 = vector.shape_cast %58 : vector<1x1x8x16xf32> to vector<8x16xf32>
    %60 = vector.shape_cast %57 : vector<8x16xf32> to vector<1x1x8x16xf32>
    tpu.vector_store %arg10[%c0_39, %c1_40, %c0_41, %c0_42], %60 {strides = array<i32>} : memref<1x2x8x16xf32, #tpu.memory_space<vmem>>, vector<1x1x8x16xf32>,
    return
  }
  func.func @transform_0(%arg0: i32, %arg1: i32) -> (i32, i32, i32) {
    %c0_i32 = arith.constant 0 : i32
    %c0_i32_0 = arith.constant 0 : i32
    return %arg0, %arg1, %c0_i32 : i32, i32, i32
  }
  func.func @transform_1(%arg0: i32, %arg1: i32) -> (i32, i32, i32) {
    %c0_i32 = arith.constant 0 : i32
    %c0_i32_0 = arith.constant 0 : i32
    %c0_i32_1 = arith.constant 0 : i32
    return %arg0, %c0_i32, %c0_i32_0 : i32, i32, i32
  }
  func.func @transform_2(%arg0: i32, %arg1: i32) -> (i32, i32) {
    %c0_i32 = arith.constant 0 : i32
    %c0_i32_0 = arith.constant 0 : i32
    %c0_i32_1 = arith.constant 0 : i32
    return %c0_i32, %c0_i32_0 : i32, i32
  }
  func.func @transform_3(%arg0: i32, %arg1: i32) -> (i32, i32) {
    %c0_i32 = arith.constant 0 : i32
    %c0_i32_0 = arith.constant 0 : i32
    %c0_i32_1 = arith.constant 0 : i32
    return %c0_i32, %c0_i32_0 : i32, i32
  }
  func.func @transform_4(%arg0: i32, %arg1: i32) -> (i32, i32) {
    %c0_i32 = arith.constant 0 : i32
    %c0_i32_0 = arith.constant 0 : i32
    %c0_i32_1 = arith.constant 0 : i32
    return %c0_i32, %c0_i32_0 : i32, i32
  }
  func.func @transform_5(%arg0: i32, %arg1: i32) -> (i32, i32) {
    %c0_i32 = arith.constant 0 : i32
    %c0_i32_0 = arith.constant 0 : i32
    %c0_i32_1 = arith.constant 0 : i32
    return %c0_i32, %c0_i32_0 : i32, i32
  }
  func.func @transform_6(%arg0: i32, %arg1: i32) -> (i32, i32, i32, i32) {
    %c0_i32 = arith.constant 0 : i32
    %c0_i32_0 = arith.constant 0 : i32
    %c0_i32_1 = arith.constant 0 : i32
    return %arg0, %c0_i32, %arg1, %c0_i32_0 : i32, i32, i32, i32
  }
  func.func @transform_7(%arg0: i32, %arg1: i32) -> (i32, i32, i32, i32) {
    %c0_i32 = arith.constant 0 : i32
    %c0_i32_0 = arith.constant 0 : i32
    %c0_i32_1 = arith.constant 0 : i32
    return %arg0, %c0_i32, %arg1, %c0_i32_0 : i32, i32, i32, i32
  }
  func.func @transform_8(%arg0: i32, %arg1: i32) -> (i32, i32, i32, i32) {
    %c0_i32 = arith.constant 0 : i32
    %c0_i32_0 = arith.constant 0 : i32
    %c0_i32_1 = arith.constant 0 : i32
    return %arg0, %c0_i32, %arg1, %c0_i32_0 : i32, i32, i32, i32
  }
}

</mosaic_0001>

<bundles_post_ra>
// kernel: tpu_custom_call.1
= control target key start
LH: loop header
LB: loop body
LE: loop exit
PB: predicated region body
PF: predicated region fallthrough
CT: control target
= control target key end

     0   :  { %s1578_s0 = inlined_call_operand.hbm [shape: f32[2,16,32], index: 0, kind: input, shape index: {}]   ;;  %s1579_s1 = inlined_call_operand.vmem [shape: f32[2,1,32], index: 1, kind: input, shape index: {}]   ;;  %s1580_s2 = inlined_call_operand.vmem [shape: f32[1,32], index: 2, kind: input, shape index: {}]   ;;  %s1581_s3 = inlined_call_operand.vmem [shape: f32[1,32], index: 3, kind: input, shape index: {}]   ;;  %s1582_s4 = inlined_call_operand.hbm [shape: f32[32,96], index: 4, kind: input, shape index: {}]   ;;  %s1583_s5 = inlined_call_operand.vmem [shape: f32[1,96], index: 5, kind: input, shape index: {}]   ;;  %s1584_s6 = inlined_call_operand.hbm [shape: f32[2,2,16,16], index: 6, kind: output, shape index: {0}]   ;;  %s1585_s7 = inlined_call_operand.hbm [shape: f32[2,2,16,16], index: 7, kind: output, shape index: {1}]   ;;  %s1586_s8 = inlined_call_operand.hbm [shape: f32[2,2,16,16], index: 8, kind: output, shape index: {2}]  }
   0x1   :  { %1599 = sst [smem:[#allocation20_spill]] %s1578_s0 }
   0x2   :  { %1600 = sst [smem:[#allocation21_spill]] %s1579_s1 }
   0x3   :  { %1601 = sst [smem:[#allocation22_spill]] %s1580_s2 }
   0x4   :  { %1602 = sst [smem:[#allocation23_spill]] %s1581_s3 }
   0x5   :  { %1603 = sst [smem:[#allocation24_spill]] %s1582_s4 }
   0x6   :  { %1604 = sst [smem:[#allocation25_spill]] %s1584_s6 }
   0x7   :  { %1605 = sst [smem:[#allocation26_spill]] %s1585_s7 }
   0x8   :  { %1606 = sst [smem:[#allocation27_spill]] %s1586_s8 }
   0x9   :  { %14 = vsyncpa [#allocation3], 0 }
   0xa   :  { %16 = vsyncpa [#allocation3 + $0x1], 0 }
   0xb   :  { %17 = vsyncpa [#allocation6], 0 }
   0xc   :  { %18 = vsyncpa [#allocation4], 0 }
   0xd   :  { %20 = vsyncpa [#allocation4 + $0x1], 0 }
   0xe   :  { %21 = vsyncpa [#allocation9], 0 }
   0xf   :  { %23 = vsyncpa [#allocation9 + $0x1], 0  ;;  %s1227_s27 = smov 0   ;;  %s1229_s28 = smov 0  }
  0x10   :  { %s1231_s29 = smov 0   ;;  %s1233_s30 = smov 0  }
  0x11   :  { %s1235_s9 = smov 0   ;;  %s1237_s10 = smov 0  }
  0x12   :  { %s1239_s11 = smov 0   ;;  %s1241_s12 = smov 0  }
  0x13 LB: > { %1607 = sst [smem:[#allocation15_spill]] %s1134_s27  ;;  %s1268_s13 = sadd.s32 4294967295, %s1162_s12   ;;  %s1162_s12 = sphi %s1241_s12, %s29_s12   ;;  %s1158_s11 = sphi %s1239_s11, %s1645_s11   ;;  %s1154_s10 = sphi %s1237_s10, %s1644_s10   ;;  %s1150_s9 = sphi %s1235_s9, %s1643_s9   ;;  %s1146_s30 = sphi %s1233_s30, %s1642_s30   ;;  %s1142_s29 = sphi %s1231_s29, %s1641_s29   ;;  %s1138_s28 = sphi %s1229_s28, %s1640_s28   ;;  %s1134_s27 = sphi %s1227_s27, %s1639_s27  }
  0x14   : > { %1608 = sst [smem:[#allocation16_spill]] %s1146_s30  ;;  %s1587_s14 = sadd.s32 4294967294, %s1162_s12  }
  0x15   : > { %p63_p0 = scmp.ne.s32.totalorder %s1138_s28, %s1134_s27  ;;  %p1588_p1 = scmp.eq.s32.totalorder %s1268_s13, 0 }
  0x16   : > { %p205_p3 = scmp.eq.s32.totalorder %s1587_s14, 3  ;;  %p775_p5 = scmp.ge.s32.totalorder %s1162_s12, 1 }
  0x17   : > { %p1279_p4 = por %p1588_p1, %p63_p0  ;;  %p268_p7 = scmp.lt.s32.totalorder %s1162_s12, 5 }
  0x18   : > { %p1284_p6 = por %p205_p3, %p63_p0  ;;  %s1164_s18 = smov [#allocation5]  }
  0x19   : > { %s1609_s15 = scalar_select %p1279_p4, 1, 0 }
  0x1a   : > { %s1610_s16 = scalar_select %p1284_p6, 1, 0 }
  0x1b   : > { %p1289_p8 = pnand %p775_p5, %p268_p7  ;;  %s286_s19 = sshll.u32 %s1164_s18, 4  ;;  %s287_s19 = int_to_ptr.vmem [resolvable:$true] %s286_s19 }
  0x1c   : > { %1611 = sst [smem:[#allocation17_spill]] %s1610_s16  ;;  %s1614_s4 = sld [smem:[#allocation24_spill]] }
  0x1d   : > { %s1612_s17 = scalar_select %p1289_p8, 1, 0 }
  0x1e   : > { %p840_p9 = pneg %p1289_p8 }
  0x20   : > { %p1297_p10 = pnand %p840_p9, %p1588_p1 }
  0x22   : > { %s942_s23 = scalar_lea.hbm %s1614_s4, 512  ;;  %p944_p12 = pneg %p1297_p10 }
  0x23   : > { %p943_p11 = scmp.ne.s32.totalorder %s1614_s4, %s942_s23  ;;  %p949_p3 = scmp.lt.u32.totalorder %s942_s23, %s1614_s4 }
  0x25   : > { %p945_p13 = pnand %p944_p12, %p943_p11 }
  0x27   : > { %p946_p0 = pneg %p945_p13 }
  0x29   : > { %p951_p5 = pnand %p949_p3, %p946_p0 }
  0x2b   : > { %954 = shalt.err (!%p951_p5)
}
  0x2c   : > { %s955_s14 = scalar_lea.vmem %s287_s19, 512  ;;  %p963_p2 = scmp.lt.s32.totalorder %s287_s19, %s287_s19 }
  0x2d   : > { %p956_p7 = scmp.ne.s32.totalorder %s287_s19, %s955_s14  ;;  %p964_p6 = scmp.lt.s32.totalorder %s955_s14, %s955_s14 }
  0x2f   : > { %p958_p9 = pnand %p956_p7, %p944_p12  ;;  %p965_p4 = por %p964_p6, %p963_p2 }
  0x31   : > { %p959_p1 = pneg %p958_p9 }
  0x33   : > { %p966_p8 = pnand %p965_p4, %p959_p1 }
  0x35   : > { %969 = shalt.err (!%p966_p8)
}
  0x36   : > { %s1165_s21 = smov 128   ;;  %s1166_s22 = smov 8  }
  0x37   : > { %843 = dma.hbm_to_vmem [thread:$0]  (!%p1297_p10), %s1614_s4, 512, %s287_s19, [#allocation6], %s1165_s21, %s1165_s21, %s1166_s22  }
  0x38   : > { %s38_s14 = sadd.s32 1, %s1154_s10  ;;  %s41_s25 = sadd.s32 1, %s1158_s11 }
  0x39   : > { %p39_p1 = scmp.ge.s32.totalorder %s38_s14, 2  ;;  %s50_s26 = sadd.s32 1, %s1142_s29 }
  0x3a   : > { %p57_p2 = scmp.ne.s32.totalorder %s1142_s29, %s1138_s28  ;;  %p58_p4 = scmp.eq.s32.totalorder %s1162_s12, 0 }
  0x3b   : > { %s1647_s14 = smov (%p39_p1, %s38_s14), 0  ;;  %s1649_s25 = smov (!%p39_p1, %s41_s25), %s1158_s11 }
  0x3c   : > { %1615 = sst [smem:[#allocation18_spill]] %s1647_s14  ;;  %s46_s18 = ssub.s32 %s1154_s10, %s1647_s14 }
  0x3d   : > { %p43_p6 = scmp.ge.s32.totalorder %s1649_s25, 2  ;;  %p1616_p8 = scmp.eq.s32.totalorder %s1268_s13, 3 }
  0x3e   : > { %p1334_p10 = por %p58_p4, %p57_p2  ;;  %p859_p12 = scmp.lt.s32.totalorder %s1162_s12, 4 }
  0x3f   : > { %p1330_p11 = por %p1616_p8, %p57_p2  ;;  %s1651_s25 = smov (%p43_p6, %s1649_s25), 0 }
  0x40   : > { %s303_s21 = sand.u32 1, %s1142_s29   ;;  %s779_s22 = sshll.u32 %s1158_s11, 1 }
  0x41   : > { %s1617_s20 = scalar_select %p1330_p11, 1, 0 }
  0x42   : > { %s45_s23 = ssub.s32 %s1158_s11, %s1651_s25  ;;  %s778_s4 = sshll.u32 %s303_s21, 3 }
  0x43   : > { %1618 = sst [smem:[#allocation19_spill]] %s1617_s20  ;;  %s47_s24 = sor.u32 %s46_s18, %s45_s23 }
  0x44   : > { %p48_p13 = scmp.eq.s32.totalorder %s47_s24, 0  ;;  %s312_s14 = sadd.s32 %s1154_s10, %s779_s22 }
  0x45   : > { %s307_s16 = scalar_lea.vmem [#allocation2], %s778_s4  ;;  %s780_s6 = sshll.u32 %s312_s14, 7 }
  0x46   : > { %s316_s27 = sshll.u32 %s307_s16, 4  ;;  %s1620_s0 = sld [smem:[#allocation20_spill]]  ;;  %s1349_s27 = int_to_ptr.vmem [resolvable:$true] %s316_s27 }
  0x47   : > { %s1347_s8 = scalar_select %p48_p13, %s1142_s29, %s50_s26  }
  0x48   : > { %p1360_p0 = pnand %p859_p12, %p1334_p10  ;;  %s304_s4 = scalar_lea.sflag [#allocation3], %s303_s21 }
  0x4a   : > { %p972_p5 = pneg %p1360_p0 }
  0x4c   : > { %s1354_s30 = scalar_lea.hbm %s1620_s0, %s780_s6  ;;  %s975_s14 = scalar_lea.hbm %s1620_s0, 512 }
  0x4d   : > { %s970_s16 = scalar_lea.hbm %s1354_s30, 128  ;;  %p976_p1 = scmp.lt.u32.totalorder %s1354_s30, %s1620_s0 }
  0x4e   : > { %p971_p3 = scmp.ne.s32.totalorder %s1354_s30, %s970_s16  ;;  %p977_p2 = scmp.lt.u32.totalorder %s975_s14, %s970_s16 }
  0x4f   : > { %p979_p6 = scmp.lt.u32.totalorder %s970_s16, %s1354_s30 }
  0x50   : > { %p973_p7 = pnand %p972_p5, %p971_p3  ;;  %p978_p4 = por %p977_p2, %p976_p1 }
  0x52   : > { %p974_p9 = pneg %p973_p7  ;;  %p980_p8 = por %p979_p6, %p978_p4 }
  0x54   : > { %p981_p10 = pnand %p980_p8, %p974_p9 }
  0x56   : > { %984 = shalt.err (!%p981_p10)
}
  0x57   : > { %s985_s19 = scalar_lea.vmem %s1349_s27, 128  ;;  %s1167_s21 = smov [#allocation2]  }
  0x58   : > { %p986_p12 = scmp.ne.s32.totalorder %s1349_s27, %s985_s19  ;;  %s990_s22 = sshll.u32 %s1167_s21, 4  ;;  %s991_s22 = int_to_ptr.vmem [resolvable:$false] %s990_s22 }
  0x59   : > { %s992_s23 = scalar_lea.vmem %s991_s22, 256  ;;  %p993_p7 = scmp.lt.s32.totalorder %s1349_s27, %s991_s22 }
  0x5a   : > { %p988_p13 = pnand %p986_p12, %p972_p5  ;;  %p994_p1 = scmp.lt.s32.totalorder %s992_s23, %s985_s19 }
  0x5c   : > { %p989_p3 = pneg %p988_p13  ;;  %p995_p2 = por %p994_p1, %p993_p7 }
  0x5e   : > { %p996_p4 = pnand %p995_p2, %p989_p3 }
  0x60   : > { %999 = shalt.err (!%p996_p4)
}
  0x61   : > { %847 = dma.hbm_to_vmem [thread:$0]  (!%p1360_p0), %s1354_s30, 128, %s1349_s27, %s304_s4  }
  0x62   : > { %p1622_p9 = scmp.ne.s32.totalorder %s1612_s17, 0 }
  0x63   : > { %s1392_s24 = sand.u32 (!%p1622_p9), 1, %s1138_s28   ;;  %p1623_p5 = scmp.ne.s32.totalorder (!%p1622_p9), %s1609_s15, 0 }
  0x64   : > { %331 = sbr.rel (%p1622_p9) target bundleno = 823 (0x337), region = 44  ;;  %s782_s16 = sshll.u32 (!%p1622_p9), %s1392_s24, 3 }
  0x65   : > { %s334_s6 = scalar_lea.sflag (!%p1622_p9), [#allocation3], %s1392_s24  ;;  %s337_s7 = scalar_lea.vmem (!%p1622_p9), [#allocation2], %s782_s16 }
  0x6b   : > { %1117 = dma.done.wait (%p1623_p5), %s334_s6, 128  }
  0x6c   : > { %1119 = vsyncadd (%p1623_p5), %s334_s6, 4294967168  ;;  %p1624_p6 = scmp.eq.s32.totalorder %s1268_s13, 0 }
  0x6e   : > { %1121 = dma.done.wait (%p1624_p6), [#allocation6], 512   ;;  %p1625_p0 = pmov %p1624_p6 }
  0x6f   : > { %vm393_vm0 = vcmask 261120   ;;  %v390_v0 = vld [vmem:[%s337_s7] sm:$0xff]  ;;  %v430_v7 = vld [vmem:[#allocation5] sm:$0xff]  ;;  %v431_v8 = vld [vmem:[#allocation5 + $0x8] sm:$0xff]  ;;  %v1168_v10 = vmov 0.0|0.0   ;;  %vm1169_vm1 = vmmov 0  }
  0x70   : > { %1123 = vsyncadd (%p1625_p0), [#allocation6], 4294966784  ;;  %v394_v1 = vsel %vm393_vm0, %v390_v0, 0.0  ;;  %v823_v9 = vpack.c.bf16 %v431_v8, %v430_v7  ;;  %822 = vmatprep.subr.bf16.mxu0 %v1168_v10  ;;  %v432_v11 = vld [vmem:[#allocation5 + $0x10] sm:$0xff]  ;;  %v433_v12 = vld [vmem:[#allocation5 + $0x18] sm:$0xff]  ;;  %v1170_v14 = vmov 0.0  }
  0x71   : > { %395 = vadd.xlane.f32.xlu0 %v394_v1  ;;  %v826_v13 = vpack.c.bf16 %v433_v12, %v432_v11  ;;  %819 = vmatprep.mubr.msk.f32.mxu0 %vm1169_vm1, %v1170_v14  ;;  %p387_p8 = scmp.lt.s32.totalorder %s1150_s9, 1  ;;  %s1626_s2 = sld [smem:[#allocation22_spill]]  ;;  %v790_v26 = vld [vmem:[%s1583_s5] ss:$0 sm:$0xff]  ;;  %vm515_vm2 = vcmask 130048  }
  0x72   : > { %824 = vmatpush3.bf16.msra.mxu0 %v823_v9  ;;  %s1627_s1 = sld [smem:[#allocation21_spill]]  ;;  %s1628_s3 = sld [smem:[#allocation23_spill]] }
  0x73   : > { %825 = vmatprep.subr.bf16.mxu0 %v1168_v10  ;;  %s388_s27 = scalar_select %p387_p8, %s1150_s9, 1 }
  0x74   : > { %s784_s21 = sshll.u32 %s1392_s24, 4  ;;  %s1171_s22 = smov 64  }
  0x75   : > { %s1629_s23 = sld [smem:[#allocation16_spill]]  ;;  %s1172_s16 = smov 96  }
  0x76   : > { %827 = vmatpush3.bf16.msra.mxu0 %v826_v13  ;;  %s1422_s6 = scalar_lea.vmem [#allocation7], %s784_s21  ;;  %s1173_s7 = smov 80  }
  0x77   : > { %v787_v19 = vld [vmem:[%s1626_s2] ss:$0 sm:$0xff]  ;;  %s1175_s30 = smov 48   ;;  %s798_s15 = sshll.u32 %s1150_s9, 2 }
  0x78   : > { %s389_s4 = scalar_lea.vmem %s1627_s1, %s388_s27  ;;  %v788_v21 = vld [vmem:[%s1628_s3] ss:$0 sm:$0xff]  ;;  %s1174_s27 = smov 112  }
  0x79   : > { %v789_v23 = vld [vmem:[%s389_s4] ss:$0 sm:$0xff]  ;;  %s379_s17 = scalar_lea.vmem [#allocation8], %s784_s21  ;;  %s547_s14 = sand.u32 1, %s1268_s13  }
  0x7a   : > { %s584_s18 = sshll.u32 %s379_s17, 4  ;;  %s1433_s19 = scalar_lea.vmem [#allocation10], %s784_s21  ;;  %s1429_s18 = int_to_ptr.vmem [resolvable:$true] %s584_s18 }
  0x7b   : > { %s564_s4 = sadd.s32 %s1629_s23, %s798_s15  ;;  %s567_s9 = sshll.u32 %s1422_s6, 4  ;;  %s1446_s9 = int_to_ptr.vmem [resolvable:$true] %s567_s9 }
  0x7c   : > { %s1431_s20 = sshll.u32 %s564_s4, 7  ;;  %s1631_s23 = sld [smem:[#allocation26_spill]] }
  0x7d   : > { %s1000_s21 = scalar_lea.vmem %s1429_s18, 256 }
  0x7e   : > { %p1001_p10 = scmp.ne.s32.totalorder %s1429_s18, %s1000_s21 }
  0x80   : > { %p1002_p12 = pnand %p1001_p10, %p1330_p11 }
  0x82   : > { %p1003_p13 = pneg %p1002_p12 }
  0xfe   : > { %v396_v2 = vpop.xlane.xlu0 %395 }
  0xff   : > { %v398_v3 = vmul.f32 0.03125, %v396_v2 }
 0x101   : > { %v399_v4 = vsub.f32 %v390_v0, %v398_v3 }
 0x103   : > { %v400_v5 = vmul.f32 %v399_v4, %v399_v4 }
 0x105   : > { %v401_v6 = vsel %vm393_vm0, %v400_v5, 0.0 }
 0x106   : > { %402 = vadd.xlane.f32.xlu0 %v401_v6 }
 0x193   : > { %v403_v15 = vpop.xlane.xlu0 %402 }
 0x194   : > { %v404_v16 = vmul.f32 0.03125, %v403_v15 }
 0x196   : > { %v405_v17 = vadd.f32 1e-06, %v404_v16 }
 0x198   : > { %940 = vrsqrt.f32 %v405_v17 }
 0x1a2   : > { %v941_v18 = vpop.eup %940 }
 0x1a3   : > { %v407_v20 = vmul.f32 %v941_v18, %v399_v4 }
 0x1a5   : > { %v414_v22 = vmul.f32 %v787_v19, %v407_v20 }
 0x1a7   : > { %v421_v24 = vadd.f32 %v788_v21, %v414_v22 }
 0x1a9   : > { %v429_v25 = vadd.f32 %v789_v23, %v421_v24 }
 0x1ab   : > { %820 = vmatmul.mubr.msk.f32.vlgmr.msra.gmra.mrb[0].mxu0 %vm393_vm0, %v429_v25 }
 0x27e   : > { %v510_v27 = vpop.f32.mrb[0].mxu0 }
 0x27f   : > { %v511_v28 = vadd.f32 %v790_v26, %v510_v27  ;;  %v821_v29 = vpop.f32.mrb[1].mxu0 }
 0x281   : > { %522 = vrot.lane.b32.xlu0 %v511_v28, %s1171_s22  ;;  %518 = vrot.lane.b32.xlu1 %v511_v28, %s1172_s16  ;;  %v514_v30 = vmul.f32 0.25, %v511_v28  ;;  %s1443_s16 = scalar_lea.hbm %s1631_s23, %s1431_s20 }
 0x283   : > { %516 = vst.msk [vmem:[%s1422_s6] sm:$0xff] %vm515_vm2, %v514_v30 }
 0x285   : > { %532 = vrot.lane.b32.xlu1 %v511_v28, %s1173_s7  ;;  %s1448_s7 = scalar_lea.sflag [#allocation9], %s547_s14 }
 0x289   : > { %527 = vrot.lane.b32.xlu1 %v514_v30, %s1174_s27  ;;  %s1176_s27 = smov [#allocation8]  }
 0x28d   : > { %537 = vrot.lane.b32.xlu1 %v511_v28, %s1175_s30  ;;  %s1004_s30 = sshll.u32 %s1176_s27, 4  ;;  %s1005_s30 = int_to_ptr.vmem [resolvable:$false] %s1004_s30 }
 0x28e   : > { %s1006_s15 = scalar_lea.vmem %s1005_s30, 512  ;;  %p1007_p3 = scmp.lt.s32.totalorder %s1429_s18, %s1005_s30 }
 0x28f   : > { %p1008_p7 = scmp.lt.s32.totalorder %s1006_s15, %s1000_s21 }
 0x291   : > { %p1009_p1 = por %p1008_p7, %p1007_p3 }
 0x293   : > { %p1010_p2 = pnand %p1009_p1, %p1003_p13 }
 0x2f3   : > { %v523_v31 = vpop.permute.xlu0 %522  ;;  %v519_v32 = vpop.permute.xlu1 %518 }
 0x2f4   : > { %525 = vst.msk [vmem:[%s1433_s19] sm:$0xff] %vm515_vm2, %v523_v31  ;;  %521 = vst.msk [vmem:[%s379_s17] sm:$0xff] %vm515_vm2, %v519_v32 }
 0x2f7   : > { %v533_v33 = vpop.permute.xlu1 %532 }
 0x2f8   : > { %793 = vst.msk [vmem:[%s379_s17 + $0x8] sm:$0xff] %vm515_vm2, %v533_v33 }
 0x2f9   : > { %1013 = shalt.err (!%p1010_p2)
}
 0x2fa   : > { %s1014_s17 = scalar_lea.hbm %s1443_s16, 256  ;;  %s1018_s13 = scalar_lea.hbm %s1631_s23, 1024 }
 0x2fb   : > { %p1015_p4 = scmp.ne.s32.totalorder %s1443_s16, %s1014_s17  ;;  %p1019_p6 = scmp.lt.u32.totalorder %s1443_s16, %s1631_s23 }
 0x2fc   : > { %p1020_p0 = scmp.lt.u32.totalorder %s1018_s13, %s1014_s17  ;;  %p1022_p10 = scmp.lt.u32.totalorder %s1014_s17, %s1443_s16 }
 0x2fd   : > { %p1016_p9 = pnand %p1015_p4, %p1330_p11 }
 0x2fe   : > { %p1021_p8 = por %p1020_p0, %p1019_p6 }
 0x2ff   : > { %p1017_p5 = pneg %p1016_p9 }
 0x300   : > { %p1023_p12 = por %p1022_p10, %p1021_p8 }
 0x302   : > { %p1024_p13 = pnand %p1023_p12, %p1017_p5 }
 0x304   : > { %1027 = shalt.err (!%p1024_p13)
}
 0x305   : > { %s1177_s21 = smov 128   ;;  %s1178_s30 = smov 256   ;;  %v528_v34 = vpop.permute.xlu1 %527 }
 0x306   : > { %s1179_s15 = smov 8   ;;  %s1632_s14 = sld [smem:[#allocation25_spill]]  ;;  %792 = vst.msk [vmem:[%s1422_s6 + $0x8] sm:$0xff] %vm515_vm2, %v528_v34 }
 0x307   : > { %835 = dma.vmem_to_hbm [thread:$0]  (%p1330_p11), %s1429_s18, 256, %s1443_s16, %s1448_s7, %s1177_s21, %s1178_s30, %s1179_s15  }
 0x308   : > { %s601_s22 = sshll.u32 %s1433_s19, 4  ;;  %s543_s27 = scalar_lea.sflag [#allocation4], %s1392_s24  ;;  %s1513_s22 = int_to_ptr.vmem [resolvable:$true] %s601_s22 }
 0x309   : > { %s1028_s0 = scalar_lea.vmem %s1446_s9, 256  ;;  %s1180_s1 = smov [#allocation7]  }
 0x30a   : > { %p1029_p3 = scmp.ne.s32.totalorder %s1446_s9, %s1028_s0  ;;  %s1032_s2 = sshll.u32 %s1180_s1, 4  ;;  %s1033_s2 = int_to_ptr.vmem [resolvable:$false] %s1032_s2 }
 0x30b   : > { %s1034_s3 = scalar_lea.vmem %s1033_s2, 512  ;;  %p1035_p2 = scmp.lt.s32.totalorder %s1446_s9, %s1033_s2 }
 0x30c   : > { %s1479_s13 = scalar_lea.hbm %s1632_s14, %s1431_s20  ;;  %p1030_p7 = pnand %p1029_p3, %p1330_p11 }
 0x30d   : > { %p1036_p4 = scmp.lt.s32.totalorder %s1034_s3, %s1028_s0 }
 0x30e   : > { %p1031_p1 = pneg %p1030_p7 }
 0x30f   : > { %p1037_p9 = por %p1036_p4, %p1035_p2 }
 0x311   : > { %p1038_p5 = pnand %p1037_p9, %p1031_p1 }
 0x313   : > { %1041 = shalt.err (!%p1038_p5)
}
 0x314   : > { %s1042_s6 = scalar_lea.hbm %s1479_s13, 256  ;;  %s1046_s1 = scalar_lea.hbm %s1632_s14, 1024 }
 0x315   : > { %p1043_p6 = scmp.ne.s32.totalorder %s1479_s13, %s1042_s6  ;;  %p1047_p10 = scmp.lt.u32.totalorder %s1479_s13, %s1632_s14 }
 0x316   : > { %p1048_p12 = scmp.lt.u32.totalorder %s1046_s1, %s1042_s6  ;;  %p1050_p3 = scmp.lt.u32.totalorder %s1042_s6, %s1479_s13 }
 0x317   : > { %p1044_p0 = pnand %p1043_p6, %p1330_p11 }
 0x318   : > { %p1049_p13 = por %p1048_p12, %p1047_p10 }
 0x319   : > { %p1045_p8 = pneg %p1044_p0 }
 0x31a   : > { %p1051_p7 = por %p1050_p3, %p1049_p13 }
 0x31c   : > { %p1052_p1 = pnand %p1051_p7, %p1045_p8 }
 0x31e   : > { %1055 = shalt.err (!%p1052_p1)
}
 0x31f   : > { %834 = dma.vmem_to_hbm [thread:$0]  (%p1330_p11), %s1446_s9, 256, %s1479_s13, %s543_s27, %s1177_s21, %s1178_s30, %s1179_s15   ;;  %v538_v35 = vpop.permute.xlu1 %537 }
 0x320   : > { %s1633_s4 = sld [smem:[#allocation27_spill]]  ;;  %794 = vst.msk [vmem:[%s1433_s19 + $0x8] sm:$0xff] %vm515_vm2, %v538_v35  ;;  %s1056_s24 = scalar_lea.vmem %s1513_s22, 256 }
 0x321   : > { %p1057_p2 = scmp.ne.s32.totalorder %s1513_s22, %s1056_s24  ;;  %s1181_s9 = smov [#allocation10]  }
 0x322   : > { %s1060_s13 = sshll.u32 %s1181_s9, 4  ;;  %s1061_s13 = int_to_ptr.vmem [resolvable:$false] %s1060_s13 }
 0x323   : > { %p1058_p4 = pnand %p1057_p2, %p1330_p11  ;;  %s1062_s27 = scalar_lea.vmem %s1061_s13, 512 }
 0x324   : > { %p1063_p5 = scmp.lt.s32.totalorder %s1513_s22, %s1061_s13  ;;  %p1064_p6 = scmp.lt.s32.totalorder %s1062_s27, %s1056_s24 }
 0x325   : > { %p1059_p9 = pneg %p1058_p4 }
 0x326   : > { %s1519_s6 = scalar_lea.hbm %s1633_s4, %s1431_s20  ;;  %p1065_p0 = por %p1064_p6, %p1063_p5 }
 0x328   : > { %p1066_p8 = pnand %p1065_p0, %p1059_p9 }
 0x32a   : > { %1069 = shalt.err (!%p1066_p8)
}
 0x32b   : > { %s1070_s20 = scalar_lea.hbm %s1519_s6, 256  ;;  %s1074_s16 = scalar_lea.hbm %s1633_s4, 1024 }
 0x32c   : > { %p1071_p10 = scmp.ne.s32.totalorder %s1519_s6, %s1070_s20  ;;  %p1075_p3 = scmp.lt.u32.totalorder %s1519_s6, %s1633_s4 }
 0x32d   : > { %p1076_p7 = scmp.lt.u32.totalorder %s1074_s16, %s1070_s20  ;;  %p1078_p2 = scmp.lt.u32.totalorder %s1070_s20, %s1519_s6 }
 0x32e   : > { %p1072_p12 = pnand %p1071_p10, %p1330_p11 }
 0x32f   : > { %p1077_p1 = por %p1076_p7, %p1075_p3 }
 0x330   : > { %p1073_p13 = pneg %p1072_p12 }
 0x331   : > { %p1079_p4 = por %p1078_p2, %p1077_p1 }
 0x333   : > { %p1080_p9 = pnand %p1079_p4, %p1073_p13 }
 0x335   : > { %1083 = shalt.err (!%p1080_p9)
}
 0x336   : > { %836 = dma.vmem_to_hbm [thread:$0]  (%p1330_p11), %s1513_s22, 256, %s1519_s6, %s1448_s7, %s1177_s21, %s1178_s30, %s1179_s15  }
 0x337 PF: > { %s1634_s2 = sld [smem:[#allocation15_spill]]  ;;  %s1635_s0 = sld [smem:[#allocation17_spill]] }
 0x338   : > { %p861_p5 = scmp.ge.s32.totalorder %s1162_s12, 2 }
 0x33d   : > { %s616_s3 = sand.u32 1, %s1634_s2   ;;  %p1636_p6 = scmp.ne.s32.totalorder %s1635_s0, 0 }
 0x33e   : > { %s617_s24 = scalar_lea.sflag [#allocation4], %s616_s3 }
 0x33f   : > { %p849_p0 = pnand %p861_p5, %p1636_p6 }
 0x341   : > { %1125 = dma.done.wait (!%p849_p0), %s617_s24, 256  }
 0x342   : > { %1127 = vsyncadd (!%p849_p0), %s617_s24, 4294967040  ;;  %s1637_s26 = sadd.s32 4294967294, %s1162_s12  }
 0x343   : > { %s625_s9 = sand.u32 1, %s1637_s26  }
 0x344   : > { %s626_s13 = scalar_lea.sflag [#allocation9], %s625_s9 }
 0x345   : > { %1129 = dma.done.wait (!%p849_p0), %s626_s13, 512  }
 0x346   : > { %1131 = vsyncadd (!%p849_p0), %s626_s13, 4294966784  ;;  %s29_s12 = sadd.s32 1, %s1162_s12   ;;  %s1638_s7 = sld [smem:[#allocation18_spill]] }
 0x347   : > { %p26_p11 = scmp.ge.s32.totalorder %s29_s12, 6   ;;  %s1639_s27 = smov %s1138_s28 }
 0x348   : > { %s1640_s28 = smov %s1142_s29  ;;  %s1641_s29 = smov %s1347_s8 }
 0x349   : > { %s1642_s30 = smov %s1154_s10  ;;  %s1643_s9 = smov %s1158_s11 }
 0x34a   : > { %s1645_s11 = smov %s1651_s25  ;;  %28 = sbr.rel (!%p26_p11) target bundleno = 19 (0x13), region = 131 }
 0x34c   : > { %s1644_s10 = smov %s1638_s7 }
 0x351   :  { %640 = vsyncpa [#allocation3], 1 }
 0x352   :  { %642 = vsyncpa [#allocation3 + $0x1], 1 }
 0x353   :  { %643 = vsyncpa [#allocation6], 1 }
 0x354   :  { %644 = vsyncpa [#allocation4], 1 }
 0x355   :  { %646 = vsyncpa [#allocation4 + $0x1], 1 }
 0x356   :  { %647 = vsyncpa [#allocation9], 1 }
 0x357   :  { %649 = vsyncpa [#allocation9 + $0x1], 1 }

// kernel: tpu_custom_call.1
= control target key start
LH: loop header
LB: loop body
LE: loop exit
PB: predicated region body
PF: predicated region fallthrough
CT: control target
= control target key end

     0   :  { %s1578_s0 = inlined_call_operand.hbm [shape: f32[2,16,32], index: 0, kind: input, shape index: {}]   ;;  %s1579_s1 = inlined_call_operand.vmem [shape: f32[2,1,32], index: 1, kind: input, shape index: {}]   ;;  %s1580_s2 = inlined_call_operand.vmem [shape: f32[1,32], index: 2, kind: input, shape index: {}]   ;;  %s1581_s3 = inlined_call_operand.vmem [shape: f32[1,32], index: 3, kind: input, shape index: {}]   ;;  %s1582_s4 = inlined_call_operand.hbm [shape: f32[32,96], index: 4, kind: input, shape index: {}]   ;;  %s1583_s5 = inlined_call_operand.vmem [shape: f32[1,96], index: 5, kind: input, shape index: {}]   ;;  %s1584_s6 = inlined_call_operand.hbm [shape: f32[2,2,16,16], index: 6, kind: output, shape index: {0}]   ;;  %s1585_s7 = inlined_call_operand.hbm [shape: f32[2,2,16,16], index: 7, kind: output, shape index: {1}]   ;;  %s1586_s8 = inlined_call_operand.hbm [shape: f32[2,2,16,16], index: 8, kind: output, shape index: {2}]  }
   0x1   :  { %1599 = sst [smem:[#allocation20_spill]] %s1578_s0 }
   0x2   :  { %1600 = sst [smem:[#allocation21_spill]] %s1579_s1 }
   0x3   :  { %1601 = sst [smem:[#allocation22_spill]] %s1580_s2 }
   0x4   :  { %1602 = sst [smem:[#allocation23_spill]] %s1581_s3 }
   0x5   :  { %1603 = sst [smem:[#allocation24_spill]] %s1582_s4 }
   0x6   :  { %1604 = sst [smem:[#allocation25_spill]] %s1584_s6 }
   0x7   :  { %1605 = sst [smem:[#allocation26_spill]] %s1585_s7 }
   0x8   :  { %1606 = sst [smem:[#allocation27_spill]] %s1586_s8 }
   0x9   :  { %14 = vsyncpa [#allocation3], 0 }
   0xa   :  { %16 = vsyncpa [#allocation3 + $0x1], 0 }
   0xb   :  { %17 = vsyncpa [#allocation6], 0 }
   0xc   :  { %18 = vsyncpa [#allocation4], 0 }
   0xd   :  { %20 = vsyncpa [#allocation4 + $0x1], 0 }
   0xe   :  { %21 = vsyncpa [#allocation9], 0 }
   0xf   :  { %23 = vsyncpa [#allocation9 + $0x1], 0  ;;  %s1227_s27 = smov 0   ;;  %s1229_s28 = smov 0  }
  0x10   :  { %s1231_s29 = smov 0   ;;  %s1233_s30 = smov 0  }
  0x11   :  { %s1235_s9 = smov 0   ;;  %s1237_s10 = smov 0  }
  0x12   :  { %s1239_s11 = smov 0   ;;  %s1241_s12 = smov 0  }
  0x13 LB: > { %1607 = sst [smem:[#allocation15_spill]] %s1134_s27  ;;  %s1268_s13 = sadd.s32 4294967295, %s1162_s12   ;;  %s1162_s12 = sphi %s1241_s12, %s29_s12   ;;  %s1158_s11 = sphi %s1239_s11, %s1645_s11   ;;  %s1154_s10 = sphi %s1237_s10, %s1644_s10   ;;  %s1150_s9 = sphi %s1235_s9, %s1643_s9   ;;  %s1146_s30 = sphi %s1233_s30, %s1642_s30   ;;  %s1142_s29 = sphi %s1231_s29, %s1641_s29   ;;  %s1138_s28 = sphi %s1229_s28, %s1640_s28   ;;  %s1134_s27 = sphi %s1227_s27, %s1639_s27  }
  0x14   : > { %1608 = sst [smem:[#allocation16_spill]] %s1146_s30  ;;  %s1587_s14 = sadd.s32 4294967294, %s1162_s12  }
  0x15   : > { %p63_p0 = scmp.ne.s32.totalorder %s1138_s28, %s1134_s27  ;;  %p1588_p1 = scmp.eq.s32.totalorder %s1268_s13, 0 }
  0x16   : > { %p205_p3 = scmp.eq.s32.totalorder %s1587_s14, 3  ;;  %p775_p5 = scmp.ge.s32.totalorder %s1162_s12, 1 }
  0x17   : > { %p1279_p4 = por %p1588_p1, %p63_p0  ;;  %p268_p7 = scmp.lt.s32.totalorder %s1162_s12, 5 }
  0x18   : > { %p1284_p6 = por %p205_p3, %p63_p0  ;;  %s1164_s18 = smov [#allocation5]  }
  0x19   : > { %s1609_s15 = scalar_select %p1279_p4, 1, 0 }
  0x1a   : > { %s1610_s16 = scalar_select %p1284_p6, 1, 0 }
  0x1b   : > { %p1289_p8 = pnand %p775_p5, %p268_p7  ;;  %s286_s19 = sshll.u32 %s1164_s18, 4  ;;  %s287_s19 = int_to_ptr.vmem [resolvable:$true] %s286_s19 }
  0x1c   : > { %1611 = sst [smem:[#allocation17_spill]] %s1610_s16  ;;  %s1614_s4 = sld [smem:[#allocation24_spill]] }
  0x1d   : > { %s1612_s17 = scalar_select %p1289_p8, 1, 0 }
  0x1e   : > { %p840_p9 = pneg %p1289_p8 }
  0x20   : > { %p1297_p10 = pnand %p840_p9, %p1588_p1 }
  0x22   : > { %s942_s23 = scalar_lea.hbm %s1614_s4, 512  ;;  %p944_p12 = pneg %p1297_p10 }
  0x23   : > { %p943_p11 = scmp.ne.s32.totalorder %s1614_s4, %s942_s23  ;;  %p949_p3 = scmp.lt.u32.totalorder %s942_s23, %s1614_s4 }
  0x25   : > { %p945_p13 = pnand %p944_p12, %p943_p11 }
  0x27   : > { %p946_p0 = pneg %p945_p13 }
  0x29   : > { %p951_p5 = pnand %p949_p3, %p946_p0 }
  0x2b   : > { %954 = shalt.err (!%p951_p5)
}
  0x2c   : > { %s955_s14 = scalar_lea.vmem %s287_s19, 512  ;;  %p963_p2 = scmp.lt.s32.totalorder %s287_s19, %s287_s19 }
  0x2d   : > { %p956_p7 = scmp.ne.s32.totalorder %s287_s19, %s955_s14  ;;  %p964_p6 = scmp.lt.s32.totalorder %s955_s14, %s955_s14 }
  0x2f   : > { %p958_p9 = pnand %p956_p7, %p944_p12  ;;  %p965_p4 = por %p964_p6, %p963_p2 }
  0x31   : > { %p959_p1 = pneg %p958_p9 }
  0x33   : > { %p966_p8 = pnand %p965_p4, %p959_p1 }
  0x35   : > { %969 = shalt.err (!%p966_p8)
}
  0x36   : > { %s1165_s21 = smov 128   ;;  %s1166_s22 = smov 8  }
  0x37   : > { %843 = dma.hbm_to_vmem [thread:$0]  (!%p1297_p10), %s1614_s4, 512, %s287_s19, [#allocation6], %s1165_s21, %s1165_s21, %s1166_s22  }
  0x38   : > { %s38_s14 = sadd.s32 1, %s1154_s10  ;;  %s41_s25 = sadd.s32 1, %s1158_s11 }
  0x39   : > { %p39_p1 = scmp.ge.s32.totalorder %s38_s14, 2  ;;  %s50_s26 = sadd.s32 1, %s1142_s29 }
  0x3a   : > { %p57_p2 = scmp.ne.s32.totalorder %s1142_s29, %s1138_s28  ;;  %p58_p4 = scmp.eq.s32.totalorder %s1162_s12, 0 }
  0x3b   : > { %s1647_s14 = smov (%p39_p1, %s38_s14), 0  ;;  %s1649_s25 = smov (!%p39_p1, %s41_s25), %s1158_s11 }
  0x3c   : > { %1615 = sst [smem:[#allocation18_spill]] %s1647_s14  ;;  %s46_s18 = ssub.s32 %s1154_s10, %s1647_s14 }
  0x3d   : > { %p43_p6 = scmp.ge.s32.totalorder %s1649_s25, 2  ;;  %p1616_p8 = scmp.eq.s32.totalorder %s1268_s13, 3 }
  0x3e   : > { %p1334_p10 = por %p58_p4, %p57_p2  ;;  %p859_p12 = scmp.lt.s32.totalorder %s1162_s12, 4 }
  0x3f   : > { %p1330_p11 = por %p1616_p8, %p57_p2  ;;  %s1651_s25 = smov (%p43_p6, %s1649_s25), 0 }
  0x40   : > { %s303_s21 = sand.u32 1, %s1142_s29   ;;  %s779_s22 = sshll.u32 %s1158_s11, 1 }
  0x41   : > { %s1617_s20 = scalar_select %p1330_p11, 1, 0 }
  0x42   : > { %s45_s23 = ssub.s32 %s1158_s11, %s1651_s25  ;;  %s778_s4 = sshll.u32 %s303_s21, 3 }
  0x43   : > { %1618 = sst [smem:[#allocation19_spill]] %s1617_s20  ;;  %s47_s24 = sor.u32 %s46_s18, %s45_s23 }
  0x44   : > { %p48_p13 = scmp.eq.s32.totalorder %s47_s24, 0  ;;  %s312_s14 = sadd.s32 %s1154_s10, %s779_s22 }
  0x45   : > { %s307_s16 = scalar_lea.vmem [#allocation2], %s778_s4  ;;  %s780_s6 = sshll.u32 %s312_s14, 7 }
  0x46   : > { %s316_s27 = sshll.u32 %s307_s16, 4  ;;  %s1620_s0 = sld [smem:[#allocation20_spill]]  ;;  %s1349_s27 = int_to_ptr.vmem [resolvable:$true] %s316_s27 }
  0x47   : > { %s1347_s8 = scalar_select %p48_p13, %s1142_s29, %s50_s26  }
  0x48   : > { %p1360_p0 = pnand %p859_p12, %p1334_p10  ;;  %s304_s4 = scalar_lea.sflag [#allocation3], %s303_s21 }
  0x4a   : > { %p972_p5 = pneg %p1360_p0 }
  0x4c   : > { %s1354_s30 = scalar_lea.hbm %s1620_s0, %s780_s6  ;;  %s975_s14 = scalar_lea.hbm %s1620_s0, 512 }
  0x4d   : > { %s970_s16 = scalar_lea.hbm %s1354_s30, 128  ;;  %p976_p1 = scmp.lt.u32.totalorder %s1354_s30, %s1620_s0 }
  0x4e   : > { %p971_p3 = scmp.ne.s32.totalorder %s1354_s30, %s970_s16  ;;  %p977_p2 = scmp.lt.u32.totalorder %s975_s14, %s970_s16 }
  0x4f   : > { %p979_p6 = scmp.lt.u32.totalorder %s970_s16, %s1354_s30 }
  0x50   : > { %p973_p7 = pnand %p972_p5, %p971_p3  ;;  %p978_p4 = por %p977_p2, %p976_p1 }
  0x52   : > { %p974_p9 = pneg %p973_p7  ;;  %p980_p8 = por %p979_p6, %p978_p4 }
  0x54   : > { %p981_p10 = pnand %p980_p8, %p974_p9 }
  0x56   : > { %984 = shalt.err (!%p981_p10)
}
  0x57   : > { %s985_s19 = scalar_lea.vmem %s1349_s27, 128  ;;  %s1167_s21 = smov [#allocation2]  }
  0x58   : > { %p986_p12 = scmp.ne.s32.totalorder %s1349_s27, %s985_s19  ;;  %s990_s22 = sshll.u32 %s1167_s21, 4  ;;  %s991_s22 = int_to_ptr.vmem [resolvable:$false] %s990_s22 }
  0x59   : > { %s992_s23 = scalar_lea.vmem %s991_s22, 256  ;;  %p993_p7 = scmp.lt.s32.totalorder %s1349_s27, %s991_s22 }
  0x5a   : > { %p988_p13 = pnand %p986_p12, %p972_p5  ;;  %p994_p1 = scmp.lt.s32.totalorder %s992_s23, %s985_s19 }
  0x5c   : > { %p989_p3 = pneg %p988_p13  ;;  %p995_p2 = por %p994_p1, %p993_p7 }
  0x5e   : > { %p996_p4 = pnand %p995_p2, %p989_p3 }
  0x60   : > { %999 = shalt.err (!%p996_p4)
}
  0x61   : > { %847 = dma.hbm_to_vmem [thread:$0]  (!%p1360_p0), %s1354_s30, 128, %s1349_s27, %s304_s4  }
  0x62   : > { %p1622_p9 = scmp.ne.s32.totalorder %s1612_s17, 0 }
  0x63   : > { %s1392_s24 = sand.u32 (!%p1622_p9), 1, %s1138_s28   ;;  %p1623_p5 = scmp.ne.s32.totalorder (!%p1622_p9), %s1609_s15, 0 }
  0x64   : > { %331 = sbr.rel (%p1622_p9) target bundleno = 823 (0x337), region = 44  ;;  %s782_s16 = sshll.u32 (!%p1622_p9), %s1392_s24, 3 }
  0x65   : > { %s334_s6 = scalar_lea.sflag (!%p1622_p9), [#allocation3], %s1392_s24  ;;  %s337_s7 = scalar_lea.vmem (!%p1622_p9), [#allocation2], %s782_s16 }
  0x6b   : > { %1117 = dma.done.wait (%p1623_p5), %s334_s6, 128  }
  0x6c   : > { %1119 = vsyncadd (%p1623_p5), %s334_s6, 4294967168  ;;  %p1624_p6 = scmp.eq.s32.totalorder %s1268_s13, 0 }
  0x6e   : > { %1121 = dma.done.wait (%p1624_p6), [#allocation6], 512   ;;  %p1625_p0 = pmov %p1624_p6 }
  0x6f   : > { %vm393_vm0 = vcmask 261120   ;;  %v390_v0 = vld [vmem:[%s337_s7] sm:$0xff]  ;;  %v430_v7 = vld [vmem:[#allocation5] sm:$0xff]  ;;  %v431_v8 = vld [vmem:[#allocation5 + $0x8] sm:$0xff]  ;;  %v1168_v10 = vmov 0.0|0.0   ;;  %vm1169_vm1 = vmmov 0  }
  0x70   : > { %1123 = vsyncadd (%p1625_p0), [#allocation6], 4294966784  ;;  %v394_v1 = vsel %vm393_vm0, %v390_v0, 0.0  ;;  %v823_v9 = vpack.c.bf16 %v431_v8, %v430_v7  ;;  %822 = vmatprep.subr.bf16.mxu0 %v1168_v10  ;;  %v432_v11 = vld [vmem:[#allocation5 + $0x10] sm:$0xff]  ;;  %v433_v12 = vld [vmem:[#allocation5 + $0x18] sm:$0xff]  ;;  %v1170_v14 = vmov 0.0  }
  0x71   : > { %395 = vadd.xlane.f32.xlu0 %v394_v1  ;;  %v826_v13 = vpack.c.bf16 %v433_v12, %v432_v11  ;;  %819 = vmatprep.mubr.msk.f32.mxu0 %vm1169_vm1, %v1170_v14  ;;  %p387_p8 = scmp.lt.s32.totalorder %s1150_s9, 1  ;;  %s1626_s2 = sld [smem:[#allocation22_spill]]  ;;  %v790_v26 = vld [vmem:[%s1583_s5] ss:$0 sm:$0xff]  ;;  %vm515_vm2 = vcmask 130048  }
  0x72   : > { %824 = vmatpush3.bf16.msra.mxu0 %v823_v9  ;;  %s1627_s1 = sld [smem:[#allocation21_spill]]  ;;  %s1628_s3 = sld [smem:[#allocation23_spill]] }
  0x73   : > { %825 = vmatprep.subr.bf16.mxu0 %v1168_v10  ;;  %s388_s27 = scalar_select %p387_p8, %s1150_s9, 1 }
  0x74   : > { %s784_s21 = sshll.u32 %s1392_s24, 4  ;;  %s1171_s22 = smov 64  }
  0x75   : > { %s1629_s23 = sld [smem:[#allocation16_spill]]  ;;  %s1172_s16 = smov 96  }
  0x76   : > { %827 = vmatpush3.bf16.msra.mxu0 %v826_v13  ;;  %s1422_s6 = scalar_lea.vmem [#allocation7], %s784_s21  ;;  %s1173_s7 = smov 80  }
  0x77   : > { %v787_v19 = vld [vmem:[%s1626_s2] ss:$0 sm:$0xff]  ;;  %s1175_s30 = smov 48   ;;  %s798_s15 = sshll.u32 %s1150_s9, 2 }
  0x78   : > { %s389_s4 = scalar_lea.vmem %s1627_s1, %s388_s27  ;;  %v788_v21 = vld [vmem:[%s1628_s3] ss:$0 sm:$0xff]  ;;  %s1174_s27 = smov 112  }
  0x79   : > { %v789_v23 = vld [vmem:[%s389_s4] ss:$0 sm:$0xff]  ;;  %s379_s17 = scalar_lea.vmem [#allocation8], %s784_s21  ;;  %s547_s14 = sand.u32 1, %s1268_s13  }
  0x7a   : > { %s584_s18 = sshll.u32 %s379_s17, 4  ;;  %s1433_s19 = scalar_lea.vmem [#allocation10], %s784_s21  ;;  %s1429_s18 = int_to_ptr.vmem [resolvable:$true] %s584_s18 }
  0x7b   : > { %s564_s4 = sadd.s32 %s1629_s23, %s798_s15  ;;  %s567_s9 = sshll.u32 %s1422_s6, 4  ;;  %s1446_s9 = int_to_ptr.vmem [resolvable:$true] %s567_s9 }
  0x7c   : > { %s1431_s20 = sshll.u32 %s564_s4, 7  ;;  %s1631_s23 = sld [smem:[#allocation26_spill]] }
  0x7d   : > { %s1000_s21 = scalar_lea.vmem %s1429_s18, 256 }
  0x7e   : > { %p1001_p10 = scmp.ne.s32.totalorder %s1429_s18, %s1000_s21 }
  0x80   : > { %p1002_p12 = pnand %p1001_p10, %p1330_p11 }
  0x82   : > { %p1003_p13 = pneg %p1002_p12 }
  0xfe   : > { %v396_v2 = vpop.xlane.xlu0 %395 }
  0xff   : > { %v398_v3 = vmul.f32 0.03125, %v396_v2 }
 0x101   : > { %v399_v4 = vsub.f32 %v390_v0, %v398_v3 }
 0x103   : > { %v400_v5 = vmul.f32 %v399_v4, %v399_v4 }
 0x105   : > { %v401_v6 = vsel %vm393_vm0, %v400_v5, 0.0 }
 0x106   : > { %402 = vadd.xlane.f32.xlu0 %v401_v6 }
 0x193   : > { %v403_v15 = vpop.xlane.xlu0 %402 }
 0x194   : > { %v404_v16 = vmul.f32 0.03125, %v403_v15 }
 0x196   : > { %v405_v17 = vadd.f32 1e-06, %v404_v16 }
 0x198   : > { %940 = vrsqrt.f32 %v405_v17 }
 0x1a2   : > { %v941_v18 = vpop.eup %940 }
 0x1a3   : > { %v407_v20 = vmul.f32 %v941_v18, %v399_v4 }
 0x1a5   : > { %v414_v22 = vmul.f32 %v787_v19, %v407_v20 }
 0x1a7   : > { %v421_v24 = vadd.f32 %v788_v21, %v414_v22 }
 0x1a9   : > { %v429_v25 = vadd.f32 %v789_v23, %v421_v24 }
 0x1ab   : > { %820 = vmatmul.mubr.msk.f32.vlgmr.msra.gmra.mrb[0].mxu0 %vm393_vm0, %v429_v25 }
 0x27e   : > { %v510_v27 = vpop.f32.mrb[0].mxu0 }
 0x27f   : > { %v511_v28 = vadd.f32 %v790_v26, %v510_v27  ;;  %v821_v29 = vpop.f32.mrb[1].mxu0 }
 0x281   : > { %522 = vrot.lane.b32.xlu0 %v511_v28, %s1171_s22  ;;  %518 = vrot.lane.b32.xlu1 %v511_v28, %s1172_s16  ;;  %v514_v30 = vmul.f32 0.25, %v511_v28  ;;  %s1443_s16 = scalar_lea.hbm %s1631_s23, %s1431_s20 }
 0x283   : > { %516 = vst.msk [vmem:[%s1422_s6] sm:$0xff] %vm515_vm2, %v514_v30 }
 0x285   : > { %532 = vrot.lane.b32.xlu1 %v511_v28, %s1173_s7  ;;  %s1448_s7 = scalar_lea.sflag [#allocation9], %s547_s14 }
 0x289   : > { %527 = vrot.lane.b32.xlu1 %v514_v30, %s1174_s27  ;;  %s1176_s27 = smov [#allocation8]  }
 0x28d   : > { %537 = vrot.lane.b32.xlu1 %v511_v28, %s1175_s30  ;;  %s1004_s30 = sshll.u32 %s1176_s27, 4  ;;  %s1005_s30 = int_to_ptr.vmem [resolvable:$false] %s1004_s30 }
 0x28e   : > { %s1006_s15 = scalar_lea.vmem %s1005_s30, 512  ;;  %p1007_p3 = scmp.lt.s32.totalorder %s1429_s18, %s1005_s30 }
 0x28f   : > { %p1008_p7 = scmp.lt.s32.totalorder %s1006_s15, %s1000_s21 }
 0x291   : > { %p1009_p1 = por %p1008_p7, %p1007_p3 }
 0x293   : > { %p1010_p2 = pnand %p1009_p1, %p1003_p13 }
 0x2f3   : > { %v523_v31 = vpop.permute.xlu0 %522  ;;  %v519_v32 = vpop.permute.xlu1 %518 }
 0x2f4   : > { %525 = vst.msk [vmem:[%s1433_s19] sm:$0xff] %vm515_vm2, %v523_v31  ;;  %521 = vst.msk [vmem:[%s379_s17] sm:$0xff] %vm515_vm2, %v519_v32 }
 0x2f7   : > { %v533_v33 = vpop.permute.xlu1 %532 }
 0x2f8   : > { %793 = vst.msk [vmem:[%s379_s17 + $0x8] sm:$0xff] %vm515_vm2, %v533_v33 }
 0x2f9   : > { %1013 = shalt.err (!%p1010_p2)
}
 0x2fa   : > { %s1014_s17 = scalar_lea.hbm %s1443_s16, 256  ;;  %s1018_s13 = scalar_lea.hbm %s1631_s23, 1024 }
 0x2fb   : > { %p1015_p4 = scmp.ne.s32.totalorder %s1443_s16, %s1014_s17  ;;  %p1019_p6 = scmp.lt.u32.totalorder %s1443_s16, %s1631_s23 }
 0x2fc   : > { %p1020_p0 = scmp.lt.u32.totalorder %s1018_s13, %s1014_s17  ;;  %p1022_p10 = scmp.lt.u32.totalorder %s1014_s17, %s1443_s16 }
 0x2fd   : > { %p1016_p9 = pnand %p1015_p4, %p1330_p11 }
 0x2fe   : > { %p1021_p8 = por %p1020_p0, %p1019_p6 }
 0x2ff   : > { %p1017_p5 = pneg %p1016_p9 }
 0x300   : > { %p1023_p12 = por %p1022_p10, %p1021_p8 }
 0x302   : > { %p1024_p13 = pnand %p1023_p12, %p1017_p5 }
 0x304   : > { %1027 = shalt.err (!%p1024_p13)
}
 0x305   : > { %s1177_s21 = smov 128   ;;  %s1178_s30 = smov 256   ;;  %v528_v34 = vpop.permute.xlu1 %527 }
 0x306   : > { %s1179_s15 = smov 8   ;;  %s1632_s14 = sld [smem:[#allocation25_spill]]  ;;  %792 = vst.msk [vmem:[%s1422_s6 + $0x8] sm:$0xff] %vm515_vm2, %v528_v34 }
 0x307   : > { %835 = dma.vmem_to_hbm [thread:$0]  (%p1330_p11), %s1429_s18, 256, %s1443_s16, %s1448_s7, %s1177_s21, %s1178_s30, %s1179_s15  }
 0x308   : > { %s601_s22 = sshll.u32 %s1433_s19, 4  ;;  %s543_s27 = scalar_lea.sflag [#allocation4], %s1392_s24  ;;  %s1513_s22 = int_to_ptr.vmem [resolvable:$true] %s601_s22 }
 0x309   : > { %s1028_s0 = scalar_lea.vmem %s1446_s9, 256  ;;  %s1180_s1 = smov [#allocation7]  }
 0x30a   : > { %p1029_p3 = scmp.ne.s32.totalorder %s1446_s9, %s1028_s0  ;;  %s1032_s2 = sshll.u32 %s1180_s1, 4  ;;  %s1033_s2 = int_to_ptr.vmem [resolvable:$false] %s1032_s2 }
 0x30b   : > { %s1034_s3 = scalar_lea.vmem %s1033_s2, 512  ;;  %p1035_p2 = scmp.lt.s32.totalorder %s1446_s9, %s1033_s2 }
 0x30c   : > { %s1479_s13 = scalar_lea.hbm %s1632_s14, %s1431_s20  ;;  %p1030_p7 = pnand %p1029_p3, %p1330_p11 }
 0x30d   : > { %p1036_p4 = scmp.lt.s32.totalorder %s1034_s3, %s1028_s0 }
 0x30e   : > { %p1031_p1 = pneg %p1030_p7 }
 0x30f   : > { %p1037_p9 = por %p1036_p4, %p1035_p2 }
 0x311   : > { %p1038_p5 = pnand %p1037_p9, %p1031_p1 }
 0x313   : > { %1041 = shalt.err (!%p1038_p5)
}
 0x314   : > { %s1042_s6 = scalar_lea.hbm %s1479_s13, 256  ;;  %s1046_s1 = scalar_lea.hbm %s1632_s14, 1024 }
 0x315   : > { %p1043_p6 = scmp.ne.s32.totalorder %s1479_s13, %s1042_s6  ;;  %p1047_p10 = scmp.lt.u32.totalorder %s1479_s13, %s1632_s14 }
 0x316   : > { %p1048_p12 = scmp.lt.u32.totalorder %s1046_s1, %s1042_s6  ;;  %p1050_p3 = scmp.lt.u32.totalorder %s1042_s6, %s1479_s13 }
 0x317   : > { %p1044_p0 = pnand %p1043_p6, %p1330_p11 }
 0x318   : > { %p1049_p13 = por %p1048_p12, %p1047_p10 }
 0x319   : > { %p1045_p8 = pneg %p1044_p0 }
 0x31a   : > { %p1051_p7 = por %p1050_p3, %p1049_p13 }
 0x31c   : > { %p1052_p1 = pnand %p1051_p7, %p1045_p8 }
 0x31e   : > { %1055 = shalt.err (!%p1052_p1)
}
 0x31f   : > { %834 = dma.vmem_to_hbm [thread:$0]  (%p1330_p11), %s1446_s9, 256, %s1479_s13, %s543_s27, %s1177_s21, %s1178_s30, %s1179_s15   ;;  %v538_v35 = vpop.permute.xlu1 %537 }
 0x320   : > { %s1633_s4 = sld [smem:[#allocation27_spill]]  ;;  %794 = vst.msk [vmem:[%s1433_s19 + $0x8] sm:$0xff] %vm515_vm2, %v538_v35  ;;  %s1056_s24 = scalar_lea.vmem %s1513_s22, 256 }
 0x321   : > { %p1057_p2 = scmp.ne.s32.totalorder %s1513_s22, %s1056_s24  ;;  %s1181_s9 = smov [#allocation10]  }
 0x322   : > { %s1060_s13 = sshll.u32 %s1181_s9, 4  ;;  %s1061_s13 = int_to_ptr.vmem [resolvable:$false] %s1060_s13 }
 0x323   : > { %p1058_p4 = pnand %p1057_p2, %p1330_p11  ;;  %s1062_s27 = scalar_lea.vmem %s1061_s13, 512 }
 0x324   : > { %p1063_p5 = scmp.lt.s32.totalorder %s1513_s22, %s1061_s13  ;;  %p1064_p6 = scmp.lt.s32.totalorder %s1062_s27, %s1056_s24 }
 0x325   : > { %p1059_p9 = pneg %p1058_p4 }
 0x326   : > { %s1519_s6 = scalar_lea.hbm %s1633_s4, %s1431_s20  ;;  %p1065_p0 = por %p1064_p6, %p1063_p5 }
 0x328   : > { %p1066_p8 = pnand %p1065_p0, %p1059_p9 }
 0x32a   : > { %1069 = shalt.err (!%p1066_p8)
}
 0x32b   : > { %s1070_s20 = scalar_lea.hbm %s1519_s6, 256  ;;  %s1074_s16 = scalar_lea.hbm %s1633_s4, 1024 }
 0x32c   : > { %p1071_p10 = scmp.ne.s32.totalorder %s1519_s6, %s1070_s20  ;;  %p1075_p3 = scmp.lt.u32.totalorder %s1519_s6, %s1633_s4 }
 0x32d   : > { %p1076_p7 = scmp.lt.u32.totalorder %s1074_s16, %s1070_s20  ;;  %p1078_p2 = scmp.lt.u32.totalorder %s1070_s20, %s1519_s6 }
 0x32e   : > { %p1072_p12 = pnand %p1071_p10, %p1330_p11 }
 0x32f   : > { %p1077_p1 = por %p1076_p7, %p1075_p3 }
 0x330   : > { %p1073_p13 = pneg %p1072_p12 }
 0x331   : > { %p1079_p4 = por %p1078_p2, %p1077_p1 }
 0x333   : > { %p1080_p9 = pnand %p1079_p4, %p1073_p13 }
 0x335   : > { %1083 = shalt.err (!%p1080_p9)
}
 0x336   : > { %836 = dma.vmem_to_hbm [thread:$0]  (%p1330_p11), %s1513_s22, 256, %s1519_s6, %s1448_s7, %s1177_s21, %s1178_s30, %s1179_s15  }
 0x337 PF: > { %s1634_s2 = sld [smem:[#allocation15_spill]]  ;;  %s1635_s0 = sld [smem:[#allocation17_spill]] }
 0x338   : > { %p861_p5 = scmp.ge.s32.totalorder %s1162_s12, 2 }
 0x33d   : > { %s616_s3 = sand.u32 1, %s1634_s2   ;;  %p1636_p6 = scmp.ne.s32.totalorder %s1635_s0, 0 }
 0x33e   : > { %s617_s24 = scalar_lea.sflag [#allocation4], %s616_s3 }
 0x33f   : > { %p849_p0 = pnand %p861_p5, %p1636_p6 }
 0x341   : > { %1125 = dma.done.wait (!%p849_p0), %s617_s24, 256  }
 0x342   : > { %1127 = vsyncadd (!%p849_p0), %s617_s24, 4294967040  ;;  %s1637_s26 = sadd.s32 4294967294, %s1162_s12  }
 0x343   : > { %s625_s9 = sand.u32 1, %s1637_s26  }
 0x344   : > { %s626_s13 = scalar_lea.sflag [#allocation9], %s625_s9 }
 0x345   : > { %1129 = dma.done.wait (!%p849_p0), %s626_s13, 512  }
 0x346   : > { %1131 = vsyncadd (!%p849_p0), %s626_s13, 4294966784  ;;  %s29_s12 = sadd.s32 1, %s1162_s12   ;;  %s1638_s7 = sld [smem:[#allocation18_spill]] }
 0x347   : > { %p26_p11 = scmp.ge.s32.totalorder %s29_s12, 6   ;;  %s1639_s27 = smov %s1138_s28 }
 0x348   : > { %s1640_s28 = smov %s1142_s29  ;;  %s1641_s29 = smov %s1347_s8 }
 0x349   : > { %s1642_s30 = smov %s1154_s10  ;;  %s1643_s9 = smov %s1158_s11 }
 0x34a   : > { %s1645_s11 = smov %s1651_s25  ;;  %28 = sbr.rel (!%p26_p11) target bundleno = 19 (0x13), region = 131 }
 0x34c   : > { %s1644_s10 = smov %s1638_s7 }
 0x351   :  { %640 = vsyncpa [#allocation3], 1 }
 0x352   :  { %642 = vsyncpa [#allocation3 + $0x1], 1 }
 0x353   :  { %643 = vsyncpa [#allocation6], 1 }
 0x354   :  { %644 = vsyncpa [#allocation4], 1 }
 0x355   :  { %646 = vsyncpa [#allocation4 + $0x1], 1 }
 0x356   :  { %647 = vsyncpa [#allocation9], 1 }
 0x357   :  { %649 = vsyncpa [#allocation9 + $0x1], 1 }

</bundles_post_ra>
